<compile_context>
chip_gen: v6e
topology: v6e:2x2x1
jax: 0.10.0
libtpu: 0.0.40
codegen_flags: <defaults>
</compile_context>

<pallas_src>
import jax
import jax.numpy as jnp
from jax.experimental import pallas as pl
from jax.experimental.pallas import tpu as pltpu

BN_EPS = 1e-5


def _prelu(x, a):
    return jnp.where(x > 0, x, a * x)


def _fold_bn(w, b, gamma, beta, mean, var):
    s = gamma / jnp.sqrt(var + BN_EPS)
    return w * s[:, None, None, None], (b - mean) * s + beta


def _make_kernel(TB, Hh, Wh, Cin, Cout):
    M = TB * Hh * Wh          # matmul M dim: all pixels of all images in the tile
    S = Hh * Wh               # spatial size per image

    def kernel(x_ref, w1_ref, w2_ref, w3_ref, p_ref, o_ref, ypad_ref):
        f32 = jnp.float32
        cdt = x_ref.dtype                      # MXU operand dtype (input dtype)

        b1, b2, b3 = p_ref[0:1, :], p_ref[1:2, :], p_ref[2:3, :]
        a1, a2, a3 = p_ref[3:4, :], p_ref[4:5, :], p_ref[5:6, :]
        a_out = p_ref[6:7, :]

        # ---- conv1: 2x2/s2 conv (BN folded) as ONE matmul over the four fused
        #      stride-2 phases (K = 4*Cin), then PReLU. -------------------------
        x = x_ref[...].reshape(M, 4 * Cin)
        acc1 = jnp.dot(x, w1_ref[...], preferred_element_type=f32) + b1
        y1 = _prelu(acc1, a1)                                    # (M, Cout) f32

        # ---- conv2: 3x3/s1/p1 (BN folded) + PReLU.  y1 is written once into a
        #      zero-padded VMEM scratch; the 9 taps are static-offset loads
        #      feeding the MXU, accumulated in a single f32 accumulator. --------
        ypad_ref[...] = jnp.zeros_like(ypad_ref)
        ypad_ref[:, 1:Hh + 1, 1:Wh + 1, :] = (
            y1.astype(cdt).reshape(TB, Hh, Wh, Cout))
        acc2 = jnp.zeros((M, Cout), f32)
        for di in range(3):
            for dj in range(3):
                patch = ypad_ref[:, di:di + Hh, dj:dj + Wh, :].reshape(M, Cout)
                acc2 = acc2 + jnp.dot(patch, w2_ref[di * 3 + dj],
                                      preferred_element_type=f32)
        y2 = _prelu(acc2 + b2, a2)

        # ---- conv3: 1x1 conv (BN folded) + PReLU.  Dropout2d(p=0) == identity.
        acc3 = jnp.dot(y2.astype(cdt), w3_ref[...],
                       preferred_element_type=f32) + b3
        y3 = _prelu(acc3, a3)

        # ---- maxpool branch: 2x2/s2 max over the four fused phases (static lane
        #      slices), channel-padded to Cout via a tiny identity matmul so no
        #      lane-axis concatenate is needed. ---------------------------------
        mp = jnp.maximum(jnp.maximum(x[:, 0:Cin], x[:, Cin:2 * Cin]),
                         jnp.maximum(x[:, 2 * Cin:3 * Cin], x[:, 3 * Cin:4 * Cin]))
        eye = (jax.lax.broadcasted_iota(jnp.int32, (Cin, Cout), 0) ==
               jax.lax.broadcasted_iota(jnp.int32, (Cin, Cout), 1)).astype(cdt)
        mp_pad = jnp.dot(mp, eye, preferred_element_type=f32)    # (M, Cout)

        # ---- residual add + final PReLU; store channel-major (flattened NCHW)
        #      so the minor (lane) dim of the store is the spatial axis. --------
        out = _prelu(y3 + mp_pad, a_out)                          # (M, Cout)
        for tb in range(TB):
            blk = out[tb * S:(tb + 1) * S, :]                     # (S, Cout)
            o_ref[0, tb] = jnp.transpose(blk, (1, 0)).astype(o_ref.dtype)

    return kernel


def bottleneck_downsampling(x_nchw, params):
    """Forward pass of BottleneckModule_Downsampling.  NCHW in, NCHW out."""
    B, Cin, H, W = x_nchw.shape
    Cout = params['w1'].shape[0]
    assert Cout >= Cin and H % 2 == 0 and W % 2 == 0
    Hh, Wh = H // 2, W // 2
    dt = x_nchw.dtype

    # Fold the three BatchNorms into the conv weights / biases (inference mode).
    w1f, b1f = _fold_bn(params['w1'], params['b1'], *params['bn1'])
    w2f, b2f = _fold_bn(params['w2'], params['b2'], *params['bn2'])
    w3f, b3f = _fold_bn(params['w3'], params['b3'], *params['bn3'])

    # Repack weights, channels-last, MXU-friendly:
    #   w1: (Cout,Cin,2,2) -> (4*Cin, Cout)   (matches the phase-fused input),
    #   w2: (Cout,Cout,3,3) -> (9, Cout, Cout),  w3: (Cout,Cout,1,1) -> (Cout, Cout).
    w1k = jnp.transpose(w1f, (2, 3, 1, 0)).reshape(4 * Cin, Cout).astype(dt)
    w2k = jnp.transpose(w2f, (2, 3, 1, 0)).reshape(9, Cout, Cout).astype(dt)
    w3k = jnp.transpose(w3f[:, :, 0, 0], (1, 0)).astype(dt)

    # One small parameter tile: 3 folded biases + 4 learnable PReLU slopes
    # (scalar slopes are broadcast to Cout lanes; per-channel slopes also work).
    def slope(name):
        a = jnp.asarray(params.get(name, 0.25), jnp.float32).reshape(-1)
        return jnp.broadcast_to(a, (Cout,))
    pk = jnp.stack([b1f, b2f, b3f,
                    slope('a1'), slope('a2'), slope('a3'), slope('a_out')],
                   axis=0).astype(jnp.float32)

    # NCHW -> phase-fused NHWC: channel layout [(kh,kw)=(0,0) | (0,1) | (1,0) | (1,1)].
    x4 = (x_nchw.reshape(B, Cin, Hh, 2, Wh, 2)
          .transpose(0, 2, 4, 3, 5, 1)
          .reshape(B, Hh, Wh, 4 * Cin))

    # Batch tile: fold several images into one grid step (per-step overhead
    # amortization); keep multiple steps when B is large (megacore sharding).
    TB = B if B <= 8 else next(t for t in (8, 4, 2, 1) if B % t == 0)
    grid = (B // TB,)

    def const_spec(shape):
        nd = len(shape)
        return pl.BlockSpec(shape, lambda b, nd=nd: (0,) * nd)

    out_cm = pl.pallas_call(
        _make_kernel(TB, Hh, Wh, Cin, Cout),
        out_shape=jax.ShapeDtypeStruct((B // TB, TB, Cout, Hh * Wh), dt),
        grid_spec=pltpu.PrefetchScalarGridSpec(
            num_scalar_prefetch=0,
            grid=grid,
            in_specs=[pl.BlockSpec((TB, Hh, Wh, 4 * Cin), lambda b: (b, 0, 0, 0)),
                      const_spec(w1k.shape), const_spec(w2k.shape),
                      const_spec(w3k.shape), const_spec(pk.shape)],
            out_specs=pl.BlockSpec((1, TB, Cout, Hh * Wh),
                                   lambda b: (b, 0, 0, 0)),
            scratch_shapes=[pltpu.VMEM((TB, Hh + 2, Wh + 2, Cout), dt)],
        ),
        compiler_params=pltpu.CompilerParams(
            dimension_semantics=("parallel",)),
    )(x4, w1k, w2k, w3k, pk)

    # Output is already channel-major: just reshape to NCHW.
    return out_cm.reshape(B, Cout, Hh, Wh)


def _reference(x_nchw, params):
    """Pure-JAX (XLA) reference of the same forward pass, NCHW."""
    w1f, b1f = _fold_bn(params['w1'], params['b1'], *params['bn1'])
    w2f, b2f = _fold_bn(params['w2'], params['b2'], *params['bn2'])
    w3f, b3f = _fold_bn(params['w3'], params['b3'], *params['bn3'])
    a1 = jnp.asarray(params.get('a1', 0.25), jnp.float32)
    a2 = jnp.asarray(params.get('a2', 0.25), jnp.float32)
    a3 = jnp.asarray(params.get('a3', 0.25), jnp.float32)
    a_out = jnp.asarray(params.get('a_out', 0.25), jnp.float32)

    def conv(x, w, b, stride, pad):
        y = jax.lax.conv_general_dilated(
            x, w, (stride, stride), [(pad, pad), (pad, pad)],
            dimension_numbers=('NCHW', 'OIHW', 'NCHW'),
            precision=jax.lax.Precision.HIGHEST)
        return y + b[None, :, None, None]

    y = _prelu(conv(x_nchw, w1f, b1f, 2, 0), a1)
    y = _prelu(conv(y, w2f, b2f, 1, 1), a2)
    y = _prelu(conv(y, w3f, b3f, 1, 0), a3)
    mp = jax.lax.reduce_window(x_nchw, -jnp.inf, jax.lax.max,
                               (1, 1, 2, 2), (1, 1, 2, 2), 'VALID')
    Cout, Cin = y.shape[1], x_nchw.shape[1]
    mp = jnp.pad(mp, ((0, 0), (0, Cout - Cin), (0, 0), (0, 0)))
    return _prelu(y + mp, a_out)


if __name__ == "__main__":
    B, Cin, Cout, H, W = 2, 4, 8, 16, 16

    key = jax.random.PRNGKey(0)
    kx, kp = jax.random.split(key)
    x = jax.random.normal(kx, (B, Cin, H, W), jnp.float32)

    ks = jax.random.split(kp, 12)

    def bn_params(kg, kb, C):
        gamma = 1.0 + 0.1 * jax.random.normal(kg, (C,), jnp.float32)
        beta = 0.1 * jax.random.normal(kb, (C,), jnp.float32)
        running_mean = 0.05 * jnp.arange(C, dtype=jnp.float32)
        running_var = 1.0 + 0.02 * jnp.arange(C, dtype=jnp.float32)
        return (gamma, beta, running_mean, running_var)

    params = dict(
        w1=0.2 * jax.random.normal(ks[0], (Cout, Cin, 2, 2), jnp.float32),
        b1=0.1 * jax.random.normal(ks[1], (Cout,), jnp.float32),
        bn1=bn_params(ks[2], ks[3], Cout),
        w2=0.2 * jax.random.normal(ks[4], (Cout, Cout, 3, 3), jnp.float32),
        b2=0.1 * jax.random.normal(ks[5], (Cout,), jnp.float32),
        bn2=bn_params(ks[6], ks[7], Cout),
        w3=0.2 * jax.random.normal(ks[8], (Cout, Cout, 1, 1), jnp.float32),
        b3=0.1 * jax.random.normal(ks[9], (Cout,), jnp.float32),
        bn3=bn_params(ks[10], ks[11], Cout),
        # learnable PReLU slopes (non-default values to exercise the plumbing)
        a1=0.2, a2=0.3, a3=0.25, a_out=0.15,
    )

    out = jax.block_until_ready(bottleneck_downsampling(x, params))
    ref = jax.block_until_ready(_reference(x, params))

    assert out.shape == (B, Cout, H // 2, W // 2), out.shape
    err = float(jnp.max(jnp.abs(out - ref)))
    assert err < 1e-4, f"mismatch vs reference: {err}"
    print("KERNEL_OK")
</pallas_src>

<mosaic_0001>
module attributes {stable_mosaic.version = 11 : i64} {
  func.func @kernel(%arg0: i32, %arg1: memref<2x8x8x16xf32, #tpu.memory_space<vmem>>, %arg2: memref<16x8xf32, #tpu.memory_space<vmem>>, %arg3: memref<9x8x8xf32, #tpu.memory_space<vmem>>, %arg4: memref<8x8xf32, #tpu.memory_space<vmem>>, %arg5: memref<7x8xf32, #tpu.memory_space<vmem>>, %arg6: memref<1x2x8x64xf32, #tpu.memory_space<vmem>>, %arg7: memref<2x10x10x8xf32, #tpu.memory_space<vmem>>) attributes {dimension_semantics = [#tpu.dimension_semantics<parallel>], iteration_bounds = array<i64: 1>, scalar_prefetch = 0 : i64, scratch_operands = 1 : i64, tpu.core_type = #tpu.core_type<tc>, window_params = [{transform_indices = @transform_0, window_bounds = array<i64: 2, 8, 8, 16>}, {pipeline_mode = #tpu.pipeline_mode<synchronous>, transform_indices = @transform_1, window_bounds = array<i64: 16, 8>}, {pipeline_mode = #tpu.pipeline_mode<synchronous>, transform_indices = @transform_2, window_bounds = array<i64: 9, 8, 8>}, {pipeline_mode = #tpu.pipeline_mode<synchronous>, transform_indices = @transform_3, window_bounds = array<i64: 8, 8>}, {pipeline_mode = #tpu.pipeline_mode<synchronous>, transform_indices = @transform_4, window_bounds = array<i64: 7, 8>}, {transform_indices = @transform_5, window_bounds = array<i64: 1, 2, 8, 64>}]} {
    %c0 = arith.constant 0 : index
    %c0_0 = arith.constant 0 : index
    %0 = vector.load %arg5[%c0, %c0_0] : memref<7x8xf32, #tpu.memory_space<vmem>>, vector<1x8xf32>
    %c1 = arith.constant 1 : index
    %c0_1 = arith.constant 0 : index
    %1 = vector.load %arg5[%c1, %c0_1] : memref<7x8xf32, #tpu.memory_space<vmem>>, vector<1x8xf32>
    %c2 = arith.constant 2 : index
    %c0_2 = arith.constant 0 : index
    %2 = vector.load %arg5[%c2, %c0_2] : memref<7x8xf32, #tpu.memory_space<vmem>>, vector<1x8xf32>
    %c3 = arith.constant 3 : index
    %c0_3 = arith.constant 0 : index
    %3 = vector.load %arg5[%c3, %c0_3] : memref<7x8xf32, #tpu.memory_space<vmem>>, vector<1x8xf32>
    %c4 = arith.constant 4 : index
    %c0_4 = arith.constant 0 : index
    %4 = vector.load %arg5[%c4, %c0_4] : memref<7x8xf32, #tpu.memory_space<vmem>>, vector<1x8xf32>
    %c5 = arith.constant 5 : index
    %c0_5 = arith.constant 0 : index
    %5 = vector.load %arg5[%c5, %c0_5] : memref<7x8xf32, #tpu.memory_space<vmem>>, vector<1x8xf32>
    %c6 = arith.constant 6 : index
    %c0_6 = arith.constant 0 : index
    %6 = vector.load %arg5[%c6, %c0_6] : memref<7x8xf32, #tpu.memory_space<vmem>>, vector<1x8xf32>
    %c0_7 = arith.constant 0 : index
    %c0_8 = arith.constant 0 : index
    %c0_9 = arith.constant 0 : index
    %c0_10 = arith.constant 0 : index
    %7 = vector.load %arg1[%c0_7, %c0_8, %c0_9, %c0_10] : memref<2x8x8x16xf32, #tpu.memory_space<vmem>>, vector<2x8x8x16xf32>
    %8 = vector.shape_cast %7 : vector<2x8x8x16xf32> to vector<128x16xf32>
    %c0_11 = arith.constant 0 : index
    %c0_12 = arith.constant 0 : index
    %9 = vector.load %arg2[%c0_11, %c0_12] : memref<16x8xf32, #tpu.memory_space<vmem>>, vector<16x8xf32>
    %cst = arith.constant dense<0.000000e+00> : vector<128x8xf32>
    %10 = tpu.matmul %8, %9, %cst {dimension_numbers = #tpu.dot_dimension_numbers<[1], [0], [0], [1], [0, 0, 1, 1], [], []>} : vector<128x16xf32>, vector<16x8xf32>, vector<128x8xf32> -> vector<128x8xf32>
    %11 = vector.broadcast %0 : vector<1x8xf32> to vector<128x8xf32>
    %12 = arith.addf %10, %11 : vector<128x8xf32>
    %cst_13 = arith.constant 0.000000e+00 : f32
    %13 = vector.broadcast %cst_13 : f32 to vector<128x8xf32>
    %14 = arith.cmpf ogt, %12, %13 : vector<128x8xf32>
    %15 = vector.broadcast %3 : vector<1x8xf32> to vector<128x8xf32>
    %16 = arith.mulf %15, %12 : vector<128x8xf32>
    %17 = arith.select %14, %12, %16 : vector<128x8xi1>, vector<128x8xf32>
    %cst_14 = arith.constant 0.000000e+00 : f32
    %18 = vector.broadcast %cst_14 : f32 to vector<2x10x10x8xf32>
    %c0_15 = arith.constant 0 : index
    %c0_16 = arith.constant 0 : index
    %c0_17 = arith.constant 0 : index
    %c0_18 = arith.constant 0 : index
    %19 = vector.load %arg7[%c0_15, %c0_16, %c0_17, %c0_18] : memref<2x10x10x8xf32, #tpu.memory_space<vmem>>, vector<2x10x10x8xf32>
    tpu.vector_store %arg7[%c0_15, %c0_16, %c0_17, %c0_18], %18 {strides = array<i32>} : memref<2x10x10x8xf32, #tpu.memory_space<vmem>>, vector<2x10x10x8xf32>,
    %20 = vector.shape_cast %17 : vector<128x8xf32> to vector<2x8x8x8xf32>
    %c0_19 = arith.constant 0 : index
    %c1_20 = arith.constant 1 : index
    %c1_21 = arith.constant 1 : index
    %c0_22 = arith.constant 0 : index
    %21 = vector.load %arg7[%c0_19, %c1_20, %c1_21, %c0_22] : memref<2x10x10x8xf32, #tpu.memory_space<vmem>>, vector<2x8x8x8xf32>
    tpu.vector_store %arg7[%c0_19, %c1_20, %c1_21, %c0_22], %20 {strides = array<i32>} : memref<2x10x10x8xf32, #tpu.memory_space<vmem>>, vector<2x8x8x8xf32>,
    %cst_23 = arith.constant 0.000000e+00 : f32
    %22 = vector.broadcast %cst_23 : f32 to vector<128x8xf32>
    %c0_24 = arith.constant 0 : index
    %c0_25 = arith.constant 0 : index
    %c0_26 = arith.constant 0 : index
    %c0_27 = arith.constant 0 : index
    %23 = vector.load %arg7[%c0_24, %c0_25, %c0_26, %c0_27] : memref<2x10x10x8xf32, #tpu.memory_space<vmem>>, vector<2x8x8x8xf32>
    %24 = vector.shape_cast %23 : vector<2x8x8x8xf32> to vector<128x8xf32>
    %c0_28 = arith.constant 0 : index
    %c0_29 = arith.constant 0 : index
    %c0_30 = arith.constant 0 : index
    %25 = vector.load %arg3[%c0_28, %c0_29, %c0_30] : memref<9x8x8xf32, #tpu.memory_space<vmem>>, vector<1x8x8xf32>
    %26 = vector.shape_cast %25 : vector<1x8x8xf32> to vector<8x8xf32>
    %cst_31 = arith.constant dense<0.000000e+00> : vector<128x8xf32>
    %27 = tpu.matmul %24, %26, %cst_31 {dimension_numbers = #tpu.dot_dimension_numbers<[1], [0], [0], [1], [0, 0, 1, 1], [], []>} : vector<128x8xf32>, vector<8x8xf32>, vector<128x8xf32> -> vector<128x8xf32>
    %28 = arith.addf %22, %27 : vector<128x8xf32>
    %c0_32 = arith.constant 0 : index
    %c0_33 = arith.constant 0 : index
    %c1_34 = arith.constant 1 : index
    %c0_35 = arith.constant 0 : index
    %29 = vector.load %arg7[%c0_32, %c0_33, %c1_34, %c0_35] : memref<2x10x10x8xf32, #tpu.memory_space<vmem>>, vector<2x8x8x8xf32>
    %30 = vector.shape_cast %29 : vector<2x8x8x8xf32> to vector<128x8xf32>
    %c1_36 = arith.constant 1 : index
    %c0_37 = arith.constant 0 : index
    %c0_38 = arith.constant 0 : index
    %31 = vector.load %arg3[%c1_36, %c0_37, %c0_38] : memref<9x8x8xf32, #tpu.memory_space<vmem>>, vector<1x8x8xf32>
    %32 = vector.shape_cast %31 : vector<1x8x8xf32> to vector<8x8xf32>
    %cst_39 = arith.constant dense<0.000000e+00> : vector<128x8xf32>
    %33 = tpu.matmul %30, %32, %cst_39 {dimension_numbers = #tpu.dot_dimension_numbers<[1], [0], [0], [1], [0, 0, 1, 1], [], []>} : vector<128x8xf32>, vector<8x8xf32>, vector<128x8xf32> -> vector<128x8xf32>
    %34 = arith.addf %28, %33 : vector<128x8xf32>
    %c0_40 = arith.constant 0 : index
    %c0_41 = arith.constant 0 : index
    %c2_42 = arith.constant 2 : index
    %c0_43 = arith.constant 0 : index
    %35 = vector.load %arg7[%c0_40, %c0_41, %c2_42, %c0_43] : memref<2x10x10x8xf32, #tpu.memory_space<vmem>>, vector<2x8x8x8xf32>
    %36 = vector.shape_cast %35 : vector<2x8x8x8xf32> to vector<128x8xf32>
    %c2_44 = arith.constant 2 : index
    %c0_45 = arith.constant 0 : index
    %c0_46 = arith.constant 0 : index
    %37 = vector.load %arg3[%c2_44, %c0_45, %c0_46] : memref<9x8x8xf32, #tpu.memory_space<vmem>>, vector<1x8x8xf32>
    %38 = vector.shape_cast %37 : vector<1x8x8xf32> to vector<8x8xf32>
    %cst_47 = arith.constant dense<0.000000e+00> : vector<128x8xf32>
    %39 = tpu.matmul %36, %38, %cst_47 {dimension_numbers = #tpu.dot_dimension_numbers<[1], [0], [0], [1], [0, 0, 1, 1], [], []>} : vector<128x8xf32>, vector<8x8xf32>, vector<128x8xf32> -> vector<128x8xf32>
    %40 = arith.addf %34, %39 : vector<128x8xf32>
    %c0_48 = arith.constant 0 : index
    %c1_49 = arith.constant 1 : index
    %c0_50 = arith.constant 0 : index
    %c0_51 = arith.constant 0 : index
    %41 = vector.load %arg7[%c0_48, %c1_49, %c0_50, %c0_51] : memref<2x10x10x8xf32, #tpu.memory_space<vmem>>, vector<2x8x8x8xf32>
    %42 = vector.shape_cast %41 : vector<2x8x8x8xf32> to vector<128x8xf32>
    %c3_52 = arith.constant 3 : index
    %c0_53 = arith.constant 0 : index
    %c0_54 = arith.constant 0 : index
    %43 = vector.load %arg3[%c3_52, %c0_53, %c0_54] : memref<9x8x8xf32, #tpu.memory_space<vmem>>, vector<1x8x8xf32>
    %44 = vector.shape_cast %43 : vector<1x8x8xf32> to vector<8x8xf32>
    %cst_55 = arith.constant dense<0.000000e+00> : vector<128x8xf32>
    %45 = tpu.matmul %42, %44, %cst_55 {dimension_numbers = #tpu.dot_dimension_numbers<[1], [0], [0], [1], [0, 0, 1, 1], [], []>} : vector<128x8xf32>, vector<8x8xf32>, vector<128x8xf32> -> vector<128x8xf32>
    %46 = arith.addf %40, %45 : vector<128x8xf32>
    %c0_56 = arith.constant 0 : index
    %c1_57 = arith.constant 1 : index
    %c1_58 = arith.constant 1 : index
    %c0_59 = arith.constant 0 : index
    %47 = vector.load %arg7[%c0_56, %c1_57, %c1_58, %c0_59] : memref<2x10x10x8xf32, #tpu.memory_space<vmem>>, vector<2x8x8x8xf32>
    %48 = vector.shape_cast %47 : vector<2x8x8x8xf32> to vector<128x8xf32>
    %c4_60 = arith.constant 4 : index
    %c0_61 = arith.constant 0 : index
    %c0_62 = arith.constant 0 : index
    %49 = vector.load %arg3[%c4_60, %c0_61, %c0_62] : memref<9x8x8xf32, #tpu.memory_space<vmem>>, vector<1x8x8xf32>
    %50 = vector.shape_cast %49 : vector<1x8x8xf32> to vector<8x8xf32>
    %cst_63 = arith.constant dense<0.000000e+00> : vector<128x8xf32>
    %51 = tpu.matmul %48, %50, %cst_63 {dimension_numbers = #tpu.dot_dimension_numbers<[1], [0], [0], [1], [0, 0, 1, 1], [], []>} : vector<128x8xf32>, vector<8x8xf32>, vector<128x8xf32> -> vector<128x8xf32>
    %52 = arith.addf %46, %51 : vector<128x8xf32>
    %c0_64 = arith.constant 0 : index
    %c1_65 = arith.constant 1 : index
    %c2_66 = arith.constant 2 : index
    %c0_67 = arith.constant 0 : index
    %53 = vector.load %arg7[%c0_64, %c1_65, %c2_66, %c0_67] : memref<2x10x10x8xf32, #tpu.memory_space<vmem>>, vector<2x8x8x8xf32>
    %54 = vector.shape_cast %53 : vector<2x8x8x8xf32> to vector<128x8xf32>
    %c5_68 = arith.constant 5 : index
    %c0_69 = arith.constant 0 : index
    %c0_70 = arith.constant 0 : index
    %55 = vector.load %arg3[%c5_68, %c0_69, %c0_70] : memref<9x8x8xf32, #tpu.memory_space<vmem>>, vector<1x8x8xf32>
    %56 = vector.shape_cast %55 : vector<1x8x8xf32> to vector<8x8xf32>
    %cst_71 = arith.constant dense<0.000000e+00> : vector<128x8xf32>
    %57 = tpu.matmul %54, %56, %cst_71 {dimension_numbers = #tpu.dot_dimension_numbers<[1], [0], [0], [1], [0, 0, 1, 1], [], []>} : vector<128x8xf32>, vector<8x8xf32>, vector<128x8xf32> -> vector<128x8xf32>
    %58 = arith.addf %52, %57 : vector<128x8xf32>
    %c0_72 = arith.constant 0 : index
    %c2_73 = arith.constant 2 : index
    %c0_74 = arith.constant 0 : index
    %c0_75 = arith.constant 0 : index
    %59 = vector.load %arg7[%c0_72, %c2_73, %c0_74, %c0_75] : memref<2x10x10x8xf32, #tpu.memory_space<vmem>>, vector<2x8x8x8xf32>
    %60 = vector.shape_cast %59 : vector<2x8x8x8xf32> to vector<128x8xf32>
    %c6_76 = arith.constant 6 : index
    %c0_77 = arith.constant 0 : index
    %c0_78 = arith.constant 0 : index
    %61 = vector.load %arg3[%c6_76, %c0_77, %c0_78] : memref<9x8x8xf32, #tpu.memory_space<vmem>>, vector<1x8x8xf32>
    %62 = vector.shape_cast %61 : vector<1x8x8xf32> to vector<8x8xf32>
    %cst_79 = arith.constant dense<0.000000e+00> : vector<128x8xf32>
    %63 = tpu.matmul %60, %62, %cst_79 {dimension_numbers = #tpu.dot_dimension_numbers<[1], [0], [0], [1], [0, 0, 1, 1], [], []>} : vector<128x8xf32>, vector<8x8xf32>, vector<128x8xf32> -> vector<128x8xf32>
    %64 = arith.addf %58, %63 : vector<128x8xf32>
    %c0_80 = arith.constant 0 : index
    %c2_81 = arith.constant 2 : index
    %c1_82 = arith.constant 1 : index
    %c0_83 = arith.constant 0 : index
    %65 = vector.load %arg7[%c0_80, %c2_81, %c1_82, %c0_83] : memref<2x10x10x8xf32, #tpu.memory_space<vmem>>, vector<2x8x8x8xf32>
    %66 = vector.shape_cast %65 : vector<2x8x8x8xf32> to vector<128x8xf32>
    %c7 = arith.constant 7 : index
    %c0_84 = arith.constant 0 : index
    %c0_85 = arith.constant 0 : index
    %67 = vector.load %arg3[%c7, %c0_84, %c0_85] : memref<9x8x8xf32, #tpu.memory_space<vmem>>, vector<1x8x8xf32>
    %68 = vector.shape_cast %67 : vector<1x8x8xf32> to vector<8x8xf32>
    %cst_86 = arith.constant dense<0.000000e+00> : vector<128x8xf32>
    %69 = tpu.matmul %66, %68, %cst_86 {dimension_numbers = #tpu.dot_dimension_numbers<[1], [0], [0], [1], [0, 0, 1, 1], [], []>} : vector<128x8xf32>, vector<8x8xf32>, vector<128x8xf32> -> vector<128x8xf32>
    %70 = arith.addf %64, %69 : vector<128x8xf32>
    %c0_87 = arith.constant 0 : index
    %c2_88 = arith.constant 2 : index
    %c2_89 = arith.constant 2 : index
    %c0_90 = arith.constant 0 : index
    %71 = vector.load %arg7[%c0_87, %c2_88, %c2_89, %c0_90] : memref<2x10x10x8xf32, #tpu.memory_space<vmem>>, vector<2x8x8x8xf32>
    %72 = vector.shape_cast %71 : vector<2x8x8x8xf32> to vector<128x8xf32>
    %c8 = arith.constant 8 : index
    %c0_91 = arith.constant 0 : index
    %c0_92 = arith.constant 0 : index
    %73 = vector.load %arg3[%c8, %c0_91, %c0_92] : memref<9x8x8xf32, #tpu.memory_space<vmem>>, vector<1x8x8xf32>
    %74 = vector.shape_cast %73 : vector<1x8x8xf32> to vector<8x8xf32>
    %cst_93 = arith.constant dense<0.000000e+00> : vector<128x8xf32>
    %75 = tpu.matmul %72, %74, %cst_93 {dimension_numbers = #tpu.dot_dimension_numbers<[1], [0], [0], [1], [0, 0, 1, 1], [], []>} : vector<128x8xf32>, vector<8x8xf32>, vector<128x8xf32> -> vector<128x8xf32>
    %76 = arith.addf %70, %75 : vector<128x8xf32>
    %77 = vector.broadcast %1 : vector<1x8xf32> to vector<128x8xf32>
    %78 = arith.addf %76, %77 : vector<128x8xf32>
    %cst_94 = arith.constant 0.000000e+00 : f32
    %79 = vector.broadcast %cst_94 : f32 to vector<128x8xf32>
    %80 = arith.cmpf ogt, %78, %79 : vector<128x8xf32>
    %81 = vector.broadcast %4 : vector<1x8xf32> to vector<128x8xf32>
    %82 = arith.mulf %81, %78 : vector<128x8xf32>
    %83 = arith.select %80, %78, %82 : vector<128x8xi1>, vector<128x8xf32>
    %c0_95 = arith.constant 0 : index
    %c0_96 = arith.constant 0 : index
    %84 = vector.load %arg4[%c0_95, %c0_96] : memref<8x8xf32, #tpu.memory_space<vmem>>, vector<8x8xf32>
    %cst_97 = arith.constant dense<0.000000e+00> : vector<128x8xf32>
    %85 = tpu.matmul %83, %84, %cst_97 {dimension_numbers = #tpu.dot_dimension_numbers<[1], [0], [0], [1], [0, 0, 1, 1], [], []>} : vector<128x8xf32>, vector<8x8xf32>, vector<128x8xf32> -> vector<128x8xf32>
    %86 = vector.broadcast %2 : vector<1x8xf32> to vector<128x8xf32>
    %87 = arith.addf %85, %86 : vector<128x8xf32>
    %cst_98 = arith.constant 0.000000e+00 : f32
    %88 = vector.broadcast %cst_98 : f32 to vector<128x8xf32>
    %89 = arith.cmpf ogt, %87, %88 : vector<128x8xf32>
    %90 = vector.broadcast %5 : vector<1x8xf32> to vector<128x8xf32>
    %91 = arith.mulf %90, %87 : vector<128x8xf32>
    %92 = arith.select %89, %87, %91 : vector<128x8xi1>, vector<128x8xf32>
    %93 = vector.extract_strided_slice %8 {offsets = [0, 0], sizes = [128, 4], strides = [1, 1]} : vector<128x16xf32> to vector<128x4xf32>
    %94 = vector.extract_strided_slice %8 {offsets = [0, 4], sizes = [128, 4], strides = [1, 1]} : vector<128x16xf32> to vector<128x4xf32>
    %95 = arith.maximumf %93, %94 : vector<128x4xf32>
    %96 = vector.extract_strided_slice %8 {offsets = [0, 8], sizes = [128, 4], strides = [1, 1]} : vector<128x16xf32> to vector<128x4xf32>
    %97 = vector.extract_strided_slice %8 {offsets = [0, 12], sizes = [128, 4], strides = [1, 1]} : vector<128x16xf32> to vector<128x4xf32>
    %98 = arith.maximumf %96, %97 : vector<128x4xf32>
    %99 = arith.maximumf %95, %98 : vector<128x4xf32>
    %100 = tpu.iota {dimensions = array<i32: 0>} : vector<4x8xi32>
    %101 = tpu.iota {dimensions = array<i32: 1>} : vector<4x8xi32>
    %102 = arith.cmpi eq, %100, %101 : vector<4x8xi32>
    %103 = arith.extui %102 : vector<4x8xi1> to vector<4x8xi32>
    %104 = arith.sitofp %103 : vector<4x8xi32> to vector<4x8xf32>
    %cst_99 = arith.constant dense<0.000000e+00> : vector<128x8xf32>
    %105 = tpu.matmul %99, %104, %cst_99 {dimension_numbers = #tpu.dot_dimension_numbers<[1], [0], [0], [1], [0, 0, 1, 1], [], []>} : vector<128x4xf32>, vector<4x8xf32>, vector<128x8xf32> -> vector<128x8xf32>
    %106 = arith.addf %92, %105 : vector<128x8xf32>
    %cst_100 = arith.constant 0.000000e+00 : f32
    %107 = vector.broadcast %cst_100 : f32 to vector<128x8xf32>
    %108 = arith.cmpf ogt, %106, %107 : vector<128x8xf32>
    %109 = vector.broadcast %6 : vector<1x8xf32> to vector<128x8xf32>
    %110 = arith.mulf %109, %106 : vector<128x8xf32>
    %111 = arith.select %108, %106, %110 : vector<128x8xi1>, vector<128x8xf32>
    %112 = vector.extract_strided_slice %111 {offsets = [0, 0], sizes = [64, 8], strides = [1, 1]} : vector<128x8xf32> to vector<64x8xf32>
    %113 = tpu.transpose %112, [1, 0] : vector<64x8xf32> -> vector<8x64xf32>
    %c0_101 = arith.constant 0 : index
    %c0_102 = arith.constant 0 : index
    %c0_103 = arith.constant 0 : index
    %c0_104 = arith.constant 0 : index
    %114 = vector.load %arg6[%c0_101, %c0_102, %c0_103, %c0_104] : memref<1x2x8x64xf32, #tpu.memory_space<vmem>>, vector<1x1x8x64xf32>
    %115 = vector.shape_cast %114 : vector<1x1x8x64xf32> to vector<8x64xf32>
    %116 = vector.shape_cast %113 : vector<8x64xf32> to vector<1x1x8x64xf32>
    tpu.vector_store %arg6[%c0_101, %c0_102, %c0_103, %c0_104], %116 {strides = array<i32>} : memref<1x2x8x64xf32, #tpu.memory_space<vmem>>, vector<1x1x8x64xf32>,
    %117 = vector.extract_strided_slice %111 {offsets = [64, 0], sizes = [64, 8], strides = [1, 1]} : vector<128x8xf32> to vector<64x8xf32>
    %118 = tpu.transpose %117, [1, 0] : vector<64x8xf32> -> vector<8x64xf32>
    %c0_105 = arith.constant 0 : index
    %c1_106 = arith.constant 1 : index
    %c0_107 = arith.constant 0 : index
    %c0_108 = arith.constant 0 : index
    %119 = vector.load %arg6[%c0_105, %c1_106, %c0_107, %c0_108] : memref<1x2x8x64xf32, #tpu.memory_space<vmem>>, vector<1x1x8x64xf32>
    %120 = vector.shape_cast %119 : vector<1x1x8x64xf32> to vector<8x64xf32>
    %121 = vector.shape_cast %118 : vector<8x64xf32> to vector<1x1x8x64xf32>
    tpu.vector_store %arg6[%c0_105, %c1_106, %c0_107, %c0_108], %121 {strides = array<i32>} : memref<1x2x8x64xf32, #tpu.memory_space<vmem>>, vector<1x1x8x64xf32>,
    return
  }
  func.func @transform_0(%arg0: i32) -> (i32, i32, i32, i32) {
    %c0_i32 = arith.constant 0 : i32
    %c0_i32_0 = arith.constant 0 : i32
    %c0_i32_1 = arith.constant 0 : i32
    %c0_i32_2 = arith.constant 0 : i32
    return %arg0, %c0_i32, %c0_i32_0, %c0_i32_1 : i32, i32, i32, i32
  }
  func.func @transform_1(%arg0: i32) -> (i32, i32) {
    %c0_i32 = arith.constant 0 : i32
    %c0_i32_0 = arith.constant 0 : i32
    %c0_i32_1 = arith.constant 0 : i32
    return %c0_i32, %c0_i32_0 : i32, i32
  }
  func.func @transform_2(%arg0: i32) -> (i32, i32, i32) {
    %c0_i32 = arith.constant 0 : i32
    %c0_i32_0 = arith.constant 0 : i32
    %c0_i32_1 = arith.constant 0 : i32
    %c0_i32_2 = arith.constant 0 : i32
    return %c0_i32, %c0_i32_0, %c0_i32_1 : i32, i32, i32
  }
  func.func @transform_3(%arg0: i32) -> (i32, i32) {
    %c0_i32 = arith.constant 0 : i32
    %c0_i32_0 = arith.constant 0 : i32
    %c0_i32_1 = arith.constant 0 : i32
    return %c0_i32, %c0_i32_0 : i32, i32
  }
  func.func @transform_4(%arg0: i32) -> (i32, i32) {
    %c0_i32 = arith.constant 0 : i32
    %c0_i32_0 = arith.constant 0 : i32
    %c0_i32_1 = arith.constant 0 : i32
    return %c0_i32, %c0_i32_0 : i32, i32
  }
  func.func @transform_5(%arg0: i32) -> (i32, i32, i32, i32) {
    %c0_i32 = arith.constant 0 : i32
    %c0_i32_0 = arith.constant 0 : i32
    %c0_i32_1 = arith.constant 0 : i32
    %c0_i32_2 = arith.constant 0 : i32
    return %arg0, %c0_i32, %c0_i32_0, %c0_i32_1 : i32, i32, i32, i32
  }
}

</mosaic_0001>

<bundles_post_ra>
// kernel: tpu_custom_call.1
= control target key start
LH: loop header
LB: loop body
LE: loop exit
PB: predicated region body
PF: predicated region fallthrough
CT: control target
= control target key end

     0   :  { %vm50_vm0 = vcmask 130048   ;;  %s5084_s0 = inlined_call_operand.vmem [shape: f32[2,8,8,16], index: 0, kind: input, shape index: {}]   ;;  %s5085_s1 = inlined_call_operand.vmem [shape: f32[16,8], index: 1, kind: input, shape index: {}]   ;;  %s5086_s2 = inlined_call_operand.vmem [shape: f32[9,8,8], index: 2, kind: input, shape index: {}]   ;;  %s5087_s3 = inlined_call_operand.vmem [shape: f32[8,8], index: 3, kind: input, shape index: {}]   ;;  %s5088_s4 = inlined_call_operand.vmem [shape: f32[7,8], index: 4, kind: input, shape index: {}]   ;;  %s5089_s5 = inlined_call_operand.hbm [shape: f32[1,2,8,64], index: 5, kind: output, shape index: {}]  }
   0x1   :  { %v45_v0 = vld [vmem:[%s5085_s1 + $0x8] sm:$0xff]  ;;  %v44_v1 = vld [vmem:[%s5085_s1] sm:$0xff]  ;;  %v4002_v4 = vld [vmem:[%s5084_s0 + $0x10] sm:$0xff]  ;;  %s3945_s1 = smov 124  }
   0x2   :  { %v3990_v2 = vld [vmem:[%s5084_s0] sm:$0xff]  ;;  %3603 = vmatprep.subr.mxu0 %v45_v0  ;;  %v3997_v3 = vld [vmem:[%s5084_s0 + $0x8] sm:$0xff]  ;;  %2692 = vrot.lane.b32.xlu1 %v4002_v4, %s3945_s1  ;;  %v4015_v5 = vld [vmem:[%s5084_s0 + $0x18] sm:$0xff] }
   0x3   :  { %3607 = vmatprep.mubr.msk.f32.mxu0 %vm50_vm0, %v3990_v2  ;;  %3604 = vmatpush3.msra.mxu0 %v45_v0 }
   0x4   :  { %2688 = vrot.lane.b32.xlu0 %v3990_v2, %s3945_s1  ;;  %3605 = vmatprep.subr.mxu0 %v44_v1 }
   0x5   :  { %3606 = vmatpush3.msra.mxu0 %v44_v1 }
   0x6   :  { %3608 = vmatmul.mubr.msk.f32.vlgmr.msra.gmra.mxu0 %vm50_vm0, %v3997_v3 }
   0x7   :  { %3610 = vmatprep.mubr.msk.f32.mxu0 %vm50_vm0, %v4002_v4 }
   0x8   :  { %2690 = vrot.lane.b32.xlu0 %v3997_v3, %s3945_s1 }
   0x9   :  { %10 = vsyncpa [#allocation4], 0  ;;  %v4022_v6 = vld [vmem:[%s5084_s0 + $0x20] sm:$0xff]  ;;  %2694 = vrot.lane.b32.xlu1 %v4015_v5, %s3945_s1  ;;  %v4033_v7 = vld [vmem:[%s5084_s0 + $0x28] sm:$0xff]  ;;  %vm296_vm1 = vcmask 64512   ;;  %vm298_vm2 = vcmask 58368  }
   0xa   :  { %3611 = vmatmul.mubr.msk.f32.gmra.mxu0 %vm50_vm0, %v4015_v5  ;;  %v4040_v8 = vld [vmem:[%s5084_s0 + $0x30] sm:$0xff]  ;;  %v4051_v9 = vld [vmem:[%s5084_s0 + $0x38] sm:$0xff]  ;;  %v4058_v10 = vld [vmem:[%s5084_s0 + $0x40] sm:$0xff]  ;;  %v3946_v18 = vmov 0.0   ;;  %s3947_s10 = smov 120  }
   0xb   :  { %3613 = vmatprep.mubr.msk.f32.mxu0 %vm50_vm0, %v4022_v6  ;;  %v4069_v11 = vld [vmem:[%s5084_s0 + $0x48] sm:$0xff]  ;;  %v4076_v12 = vld [vmem:[%s5084_s0 + $0x50] sm:$0xff]  ;;  %v4087_v13 = vld [vmem:[%s5084_s0 + $0x58] sm:$0xff]  ;;  %302 = vst.msk [vmem:[#allocation2 + $0x20] sm:$0xff] %vm296_vm1, %v3946_v18 }
   0xc   :  { %2696 = vrot.lane.b32.xlu0 %v4022_v6, %s3945_s1  ;;  %v4094_v14 = vld [vmem:[%s5084_s0 + $0x60] sm:$0xff]  ;;  %v4105_v15 = vld [vmem:[%s5084_s0 + $0x68] sm:$0xff]  ;;  %v4112_v16 = vld [vmem:[%s5084_s0 + $0x70] sm:$0xff]  ;;  %303 = vst.msk [vmem:[#allocation2 + $0x28] sm:$0x3] %vm298_vm2, %v3946_v18 }
   0xd   :  { %2698 = vrot.lane.b32.xlu1 %v4033_v7, %s3945_s1  ;;  %v4123_v17 = vld [vmem:[%s5084_s0 + $0x78] sm:$0xff]  ;;  %297 = vst.msk [vmem:[#allocation2] sm:$0xff] %vm296_vm1, %v3946_v18  ;;  %300 = vst.msk [vmem:[#allocation2 + $0x10] sm:$0xff] %vm296_vm1, %v3946_v18  ;;  %v3207_v19 = vld [vmem:[%s5086_s2 + $0x8] sm:$0xff] }
   0xe   :  { %3614 = vmatmul.mubr.msk.f32.gmra.mxu0 %vm50_vm0, %v4033_v7  ;;  %299 = vst.msk [vmem:[#allocation2 + $0x8] sm:$0x3] %vm298_vm2, %v3946_v18  ;;  %301 = vst.msk [vmem:[#allocation2 + $0x18] sm:$0x3] %vm298_vm2, %v3946_v18  ;;  %v3240_v20 = vld [vmem:[%s5086_s2 + $0x10] sm:$0xff]  ;;  %3631 = vmatprep.subr.mxu1 %v3207_v19  ;;  %v4222_v23 = vld [vmem:[%s5086_s2] sm:$0xff] }
   0xf   :  { %3616 = vmatprep.mubr.msk.f32.mxu0 %vm50_vm0, %v4040_v8  ;;  %304 = vst.msk [vmem:[#allocation2 + $0x30] sm:$0xff] %vm296_vm1, %v3946_v18  ;;  %306 = vst.msk [vmem:[#allocation2 + $0x40] sm:$0xff] %vm296_vm1, %v3946_v18  ;;  %3683 = vmatprep.subr.mxu0 %v3240_v20  ;;  %v4228_v24 = vld [vmem:[%s5086_s2 + $0x20] sm:$0xff] }
  0x10   :  { %2700 = vrot.lane.b32.xlu0 %v4040_v8, %s3945_s1  ;;  %305 = vst.msk [vmem:[#allocation2 + $0x38] sm:$0x3] %vm298_vm2, %v3946_v18  ;;  %307 = vst.msk [vmem:[#allocation2 + $0x48] sm:$0x3] %vm298_vm2, %v3946_v18  ;;  %3632 = vmatpush3.msra.mxu1 %v3207_v19  ;;  %v4260_v38 = vld [vmem:[%s5088_s4] ss:$0 sm:$0xff] }
  0x11   :  { %2702 = vrot.lane.b32.xlu1 %v4051_v9, %s3945_s1  ;;  %308 = vst.msk [vmem:[#allocation2 + $0x50] sm:$0xff] %vm296_vm1, %v3946_v18  ;;  %310 = vst.msk [vmem:[#allocation2 + $0x60] sm:$0xff] %vm296_vm1, %v3946_v18  ;;  %3684 = vmatpush3.msra.mxu0 %v3240_v20  ;;  %v4270_v40 = vld [vmem:[%s5088_s4 + $0x3] ss:$0 sm:$0xff] }
  0x12   :  { %3617 = vmatmul.mubr.msk.f32.gmra.mxu0 %vm50_vm0, %v4051_v9  ;;  %309 = vst.msk [vmem:[#allocation2 + $0x58] sm:$0x3] %vm298_vm2, %v3946_v18  ;;  %311 = vst.msk [vmem:[#allocation2 + $0x68] sm:$0x3] %vm298_vm2, %v3946_v18  ;;  %3657 = vmatprep.subr.mxu1 %v4222_v23 }
  0x13   :  { %3619 = vmatprep.mubr.msk.f32.mxu0 %vm50_vm0, %v4058_v10  ;;  %312 = vst.msk [vmem:[#allocation2 + $0x70] sm:$0xff] %vm296_vm1, %v3946_v18  ;;  %314 = vst.msk [vmem:[#allocation2 + $0x80] sm:$0xff] %vm296_vm1, %v3946_v18  ;;  %3735 = vmatprep.subr.mxu0 %v4228_v24 }
  0x14   :  { %2704 = vrot.lane.b32.xlu0 %v4058_v10, %s3945_s1  ;;  %313 = vst.msk [vmem:[#allocation2 + $0x78] sm:$0x3] %vm298_vm2, %v3946_v18  ;;  %315 = vst.msk [vmem:[#allocation2 + $0x88] sm:$0x3] %vm298_vm2, %v3946_v18 }
  0x15   :  { %2706 = vrot.lane.b32.xlu1 %v4069_v11, %s3945_s1  ;;  %316 = vst.msk [vmem:[#allocation2 + $0x90] sm:$0xff] %vm296_vm1, %v3946_v18  ;;  %318 = vst.msk [vmem:[#allocation2 + $0xa0] sm:$0xff] %vm296_vm1, %v3946_v18  ;;  %v372_v21 = vld [vmem:[#allocation2 + $0x1] sm:$0xff] }
  0x16   :  { %3620 = vmatmul.mubr.msk.f32.gmra.mxu0 %vm50_vm0, %v4069_v11  ;;  %317 = vst.msk [vmem:[#allocation2 + $0x98] sm:$0x3] %vm298_vm2, %v3946_v18  ;;  %319 = vst.msk [vmem:[#allocation2 + $0xa8] sm:$0x3] %vm298_vm2, %v3946_v18  ;;  %v776_v22 = vld [vmem:[#allocation2 + $0x2] sm:$0xff]  ;;  %3633 = vmatprep.mubr.msk.f32.mxu1 %vm296_vm1, %v372_v21 }
  0x17   :  { %3622 = vmatprep.mubr.msk.f32.mxu0 %vm50_vm0, %v4076_v12  ;;  %320 = vst.msk [vmem:[#allocation2 + $0xb0] sm:$0xff] %vm296_vm1, %v3946_v18  ;;  %322 = vst.msk [vmem:[#allocation2 + $0xc0] sm:$0xff] %vm296_vm1, %v3946_v18 }
  0x18   :  { %2708 = vrot.lane.b32.xlu0 %v4076_v12, %s3945_s1  ;;  %321 = vst.msk [vmem:[#allocation2 + $0xb8] sm:$0x3] %vm298_vm2, %v3946_v18  ;;  %323 = vst.msk [vmem:[#allocation2 + $0xc8] sm:$0x3] %vm298_vm2, %v3946_v18 }
  0x19   :  { %2710 = vrot.lane.b32.xlu1 %v4087_v13, %s3945_s1  ;;  %324 = vst.msk [vmem:[#allocation2 + $0xd0] sm:$0xff] %vm296_vm1, %v3946_v18  ;;  %326 = vst.msk [vmem:[#allocation2 + $0xe0] sm:$0xff] %vm296_vm1, %v3946_v18 }
  0x1a   :  { %3623 = vmatmul.mubr.msk.f32.gmra.mxu0 %vm50_vm0, %v4087_v13  ;;  %325 = vst.msk [vmem:[#allocation2 + $0xd8] sm:$0x3] %vm298_vm2, %v3946_v18  ;;  %327 = vst.msk [vmem:[#allocation2 + $0xe8] sm:$0x3] %vm298_vm2, %v3946_v18 }
  0x1b   :  { %3625 = vmatprep.mubr.msk.f32.mxu0 %vm50_vm0, %v4094_v14  ;;  %328 = vst.msk [vmem:[#allocation2 + $0xf0] sm:$0xff] %vm296_vm1, %v3946_v18  ;;  %330 = vst.msk [vmem:[#allocation2 + $0x100] sm:$0xff] %vm296_vm1, %v3946_v18 }
  0x1c   :  { %2712 = vrot.lane.b32.xlu0 %v4094_v14, %s3945_s1  ;;  %329 = vst.msk [vmem:[#allocation2 + $0xf8] sm:$0x3] %vm298_vm2, %v3946_v18  ;;  %331 = vst.msk [vmem:[#allocation2 + $0x108] sm:$0x3] %vm298_vm2, %v3946_v18 }
  0x1d   :  { %2714 = vrot.lane.b32.xlu1 %v4105_v15, %s3945_s1  ;;  %332 = vst.msk [vmem:[#allocation2 + $0x110] sm:$0xff] %vm296_vm1, %v3946_v18  ;;  %334 = vst.msk [vmem:[#allocation2 + $0x120] sm:$0xff] %vm296_vm1, %v3946_v18 }
  0x1e   :  { %3626 = vmatmul.mubr.msk.f32.gmra.mxu0 %vm50_vm0, %v4105_v15  ;;  %333 = vst.msk [vmem:[#allocation2 + $0x118] sm:$0x3] %vm298_vm2, %v3946_v18  ;;  %335 = vst.msk [vmem:[#allocation2 + $0x128] sm:$0x3] %vm298_vm2, %v3946_v18 }
  0x1f   :  { %3628 = vmatprep.mubr.msk.f32.mxu0 %vm50_vm0, %v4112_v16  ;;  %336 = vst.msk [vmem:[#allocation2 + $0x130] sm:$0xff] %vm296_vm1, %v3946_v18 }
  0x20   :  { %2716 = vrot.lane.b32.xlu0 %v4112_v16, %s3945_s1  ;;  %337 = vst.msk [vmem:[#allocation2 + $0x138] sm:$0x3] %vm298_vm2, %v3946_v18 }
  0x21   :  { %2718 = vrot.lane.b32.xlu1 %v4123_v17, %s3945_s1 }
  0x22   :  { %3629 = vmatmul.mubr.msk.f32.gmra.mxu0 %vm50_vm0, %v4123_v17 }
  0x23   :  { %3685 = vmatprep.mubr.msk.f32.mxu0 %vm296_vm1, %v776_v22 }
  0x74   :  { %v2693_v27 = vpop.permute.xlu1 %2692 }
  0x75   :  { %v4235_v29 = vmax.f32 %v4002_v4, %v2693_v27  ;;  %v4326_v27 = vld [vmem:[%s5086_s2 + $0x18] sm:$0xff] }
  0x76   :  { %v2689_v25 = vpop.permute.xlu0 %2688 }
  0x77   :  { %v4232_v26 = vmax.f32 %v3990_v2, %v2689_v25 }
  0x79   :  { %2768 = vrot.lane.b32.xlu0 %v4232_v26, %s3947_s10 }
  0x7a   :  { %v2691_v28 = vpop.permute.xlu0 %2690 }
  0x7b   :  { %v4238_v30 = vmax.f32 %v3997_v3, %v2691_v28  ;;  %v2695_v31 = vpop.permute.xlu1 %2694 }
  0x7c   :  { %v4245_v32 = vmax.f32 %v4015_v5, %v2695_v31 }
  0x7d   :  { %2770 = vrot.lane.b32.xlu1 %v4238_v30, %s3947_s10  ;;  %2772 = vrot.lane.b32.xlu0 %v4235_v29, %s3947_s10 }
  0x7e   :  { %v2697_v33 = vpop.permute.xlu0 %2696 }
  0x7f   :  { %v4250_v34 = vmax.f32 %v4022_v6, %v2697_v33  ;;  %v2699_v35 = vpop.permute.xlu1 %2698 }
  0x80   :  { %v4255_v36 = vmax.f32 %v4033_v7, %v2699_v35 }
  0x81   :  { %2774 = vrot.lane.b32.xlu1 %v4245_v32, %s3947_s10  ;;  %2776 = vrot.lane.b32.xlu0 %v4250_v34, %s3947_s10 }
  0x82   :  { %v2701_v37 = vpop.permute.xlu0 %2700 }
  0x83   :  { %v4265_v39 = vmax.f32 %v4040_v8, %v2701_v37  ;;  %v2703_v42 = vpop.permute.xlu1 %2702 }
  0x84   :  { %v4276_v44 = vmax.f32 %v4051_v9, %v2703_v42 }
  0x85   :  { %2778 = vrot.lane.b32.xlu1 %v4255_v36, %s3947_s10  ;;  %2780 = vrot.lane.b32.xlu0 %v4265_v39, %s3947_s10 }
  0x86   :  { %v2705_v45 = vpop.permute.xlu0 %2704 }
  0x87   :  { %v4281_v47 = vmax.f32 %v4058_v10, %v2705_v45  ;;  %v2707_v51 = vpop.permute.xlu1 %2706 }
  0x88   :  { %v4291_v56 = vmax.f32 %v4069_v11, %v2707_v51 }
  0x89   :  { %2782 = vrot.lane.b32.xlu1 %v4276_v44, %s3947_s10  ;;  %2784 = vrot.lane.b32.xlu0 %v4281_v47, %s3947_s10 }
  0x8a   :  { %v2709_v0 = vpop.permute.xlu0 %2708 }
  0x8b   :  { %v4304_v2 = vmax.f32 %v4076_v12, %v2709_v0  ;;  %v2711_v7 = vpop.permute.xlu1 %2710 }
  0x8c   :  { %v4315_v12 = vmax.f32 %v4087_v13, %v2711_v7 }
  0x8d   :  { %2786 = vrot.lane.b32.xlu1 %v4291_v56, %s3947_s10  ;;  %2788 = vrot.lane.b32.xlu0 %v4304_v2, %s3947_s10 }
  0x91   :  { %2790 = vrot.lane.b32.xlu1 %v4315_v12, %s3947_s10 }
  0xc6   :  { %v3609_v41 = vpop.f32.mrf.mxu0 }
  0xc7   :  { %v171_v43 = vadd.f32 %v3609_v41, %v4260_v38  ;;  %v2713_v41 = vpop.permute.xlu0 %2712 }
  0xc8   :  { %v165_v46 = vpop.f32.mrf.mxu0 }
  0xc9   :  { %vm245_vm3 = vcmp.gt.f32.partialorder %v171_v43, 0.0  ;;  %v265_v48 = vmul.f32 %v4270_v40, %v171_v43  ;;  %v166_v49 = vadd.f32 %v4260_v38, %v165_v46 }
  0xca   :  { %v3612_v50 = vpop.f32.mrf.mxu0 }
  0xcb   :  { %v281_v52 = vsel %vm245_vm3, %v171_v43, %v265_v48  ;;  %vm244_vm4 = vcmp.gt.f32.partialorder %v166_v49, 0.0  ;;  %v264_v53 = vmul.f32 %v4270_v40, %v166_v49  ;;  %v181_v54 = vadd.f32 %v3612_v50, %v4260_v38  ;;  %v4359_v50 = vld [vmem:[%s5086_s2 + $0x30] sm:$0xff] }
  0xcc   :  { %340 = vst.msk [vmem:[#allocation2 + $0x21] sm:$0xff] %vm296_vm1, %v281_v52  ;;  %v175_v55 = vpop.f32.mrf.mxu0  ;;  %v4347_v43 = vmax.f32 %v4094_v14, %v2713_v41  ;;  %v2715_v52 = vpop.permute.xlu1 %2714 }
  0xcd   :  { %v280_v57 = vsel %vm244_vm4, %v166_v49, %v264_v53  ;;  %vm247_vm5 = vcmp.gt.f32.partialorder %v181_v54, 0.0  ;;  %v267_v58 = vmul.f32 %v4270_v40, %v181_v54  ;;  %v176_v59 = vadd.f32 %v4260_v38, %v175_v55 }
  0xce   :  { %339 = vst.msk [vmem:[#allocation2 + $0x11] sm:$0xff] %vm296_vm1, %v280_v57  ;;  %v3615_v60 = vpop.f32.mrf.mxu0  ;;  %2792 = vrot.lane.b32.xlu0 %v4347_v43, %s3947_s10 }
  0xcf   :  { %v283_v61 = vsel %vm247_vm5, %v181_v54, %v267_v58  ;;  %vm246_vm6 = vcmp.gt.f32.partialorder %v176_v59, 0.0  ;;  %v266_v62 = vmul.f32 %v4270_v40, %v176_v59  ;;  %v191_v63 = vadd.f32 %v3615_v60, %v4260_v38 }
  0xd0   :  { %342 = vst.msk [vmem:[#allocation2 + $0x41] sm:$0xff] %vm296_vm1, %v283_v61  ;;  %v185_v1 = vpop.f32.mrf.mxu0  ;;  %v4381_v58 = vmax.f32 %v4105_v15, %v2715_v52  ;;  %vm2888_vm5 = vcmask 1043456  }
  0xd1   :  { %v282_v3 = vsel %vm246_vm6, %v176_v59, %v266_v62  ;;  %vm249_vm7 = vcmp.gt.f32.partialorder %v191_v63, 0.0  ;;  %v269_v4 = vmul.f32 %v4270_v40, %v191_v63  ;;  %v186_v5 = vadd.f32 %v4260_v38, %v185_v1 }
  0xd2   :  { %341 = vst.msk [vmem:[#allocation2 + $0x31] sm:$0xff] %vm296_vm1, %v282_v3  ;;  %v3618_v6 = vpop.f32.mrf.mxu0  ;;  %2794 = vrot.lane.b32.xlu1 %v4381_v58, %s3947_s10  ;;  %vm2839_vm6 = vcmask 31744  }
  0xd3   :  { %v285_v8 = vsel %vm249_vm7, %v191_v63, %v269_v4  ;;  %vm248_vm8 = vcmp.gt.f32.partialorder %v186_v5, 0.0  ;;  %v268_v9 = vmul.f32 %v4270_v40, %v186_v5  ;;  %v201_v10 = vadd.f32 %v3618_v6, %v4260_v38  ;;  %v4333_v13 = vld [vmem:[#allocation2 + $0x21] sm:$0xff]  ;;  %v2717_v6 = vpop.permute.xlu0 %2716 }
  0xd4   :  { %344 = vst.msk [vmem:[#allocation2 + $0x61] sm:$0xff] %vm296_vm1, %v285_v8  ;;  %v195_v11 = vpop.f32.mrf.mxu0  ;;  %v4340_v37 = vld [vmem:[#allocation2 + $0x22] sm:$0xff] }
  0xd5   :  { %v284_v19 = vsel %vm248_vm8, %v186_v5, %v268_v9  ;;  %vm251_vm9 = vcmp.gt.f32.partialorder %v201_v10, 0.0  ;;  %v271_v20 = vmul.f32 %v4270_v40, %v201_v10  ;;  %v196_v21 = vadd.f32 %v4260_v38, %v195_v11  ;;  %v4319_v22 = vld [vmem:[#allocation2 + $0x11] sm:$0xff]  ;;  %v380_v8 = vld [vmem:[#allocation2 + $0xa1] sm:$0xff] }
  0xd6   :  { %v4321_v25 = vld [vmem:[#allocation2 + $0x12] sm:$0xff]  ;;  %343 = vst.msk [vmem:[#allocation2 + $0x51] sm:$0xff] %vm296_vm1, %v284_v19  ;;  %v3621_v28 = vpop.f32.mrf.mxu0  ;;  %3634 = vmatmul.mubr.msk.f32.vlgmr.msra.gmra.mxu1 %vm296_vm1, %v4319_v22  ;;  %v784_v9 = vld [vmem:[#allocation2 + $0xa2] sm:$0xff] }
  0xd7   :  { %3686 = vmatmul.mubr.msk.f32.vlgmr.msra.gmra.mxu0 %vm296_vm1, %v4321_v25  ;;  %v287_v31 = vsel %vm251_vm9, %v201_v10, %v271_v20  ;;  %vm250_vm10 = vcmp.gt.f32.partialorder %v196_v21, 0.0  ;;  %v270_v33 = vmul.f32 %v4270_v40, %v196_v21  ;;  %v211_v35 = vadd.f32 %v3621_v28, %v4260_v38  ;;  %3658 = vmatpush3.msra.mxu1 %v4222_v23  ;;  %v4368_v51 = vld [vmem:[#allocation2 + $0x41] sm:$0xff] }
  0xd8   :  { %3636 = vmatprep.mubr.msk.f32.mxu1 %vm296_vm1, %v4333_v13  ;;  %346 = vst.msk [vmem:[#allocation2 + $0x81] sm:$0xff] %vm296_vm1, %v287_v31  ;;  %3688 = vmatprep.mubr.msk.f32.mxu0 %vm296_vm1, %v4340_v37  ;;  %v205_v42 = vpop.f32.mrf.mxu0  ;;  %v4410_v10 = vmax.f32 %v4112_v16, %v2717_v6  ;;  %v2719_v16 = vpop.permute.xlu1 %2718  ;;  %v355_v6 = vld [vmem:[#allocation2] sm:$0xff] }
  0xd9   :  { %3709 = vmatprep.subr.mxu1 %v4326_v27  ;;  %v286_v45 = vsel %vm250_vm10, %v196_v21, %v270_v33  ;;  %vm253_vm11 = vcmp.gt.f32.partialorder %v211_v35, 0.0  ;;  %v273_v23 = vmul.f32 %v4270_v40, %v211_v35  ;;  %v206_v46 = vadd.f32 %v4260_v38, %v205_v42  ;;  %v4351_v48 = vld [vmem:[#allocation2 + $0x31] sm:$0xff]  ;;  %3736 = vmatpush3.msra.mxu0 %v4228_v24  ;;  %v4370_v24 = vld [vmem:[#allocation2 + $0x42] sm:$0xff] }
  0xda   :  { %v4353_v49 = vld [vmem:[#allocation2 + $0x32] sm:$0xff]  ;;  %345 = vst.msk [vmem:[#allocation2 + $0x71] sm:$0xff] %vm296_vm1, %v286_v45  ;;  %v3624_v14 = vpop.f32.mrf.mxu0  ;;  %3637 = vmatmul.mubr.msk.f32.gmra.mxu1 %vm296_vm1, %v4351_v48  ;;  %3787 = vmatprep.subr.mxu0 %v4359_v50  ;;  %v4429_v45 = vmax.f32 %v4123_v17, %v2719_v16  ;;  %v363_v16 = vld [vmem:[#allocation2 + $0xa0] sm:$0xff] }
  0xdb   :  { %3689 = vmatmul.mubr.msk.f32.gmra.mxu0 %vm296_vm1, %v4353_v49  ;;  %v289_v53 = vsel %vm253_vm11, %v211_v35, %v273_v23  ;;  %vm252_vm12 = vcmp.gt.f32.partialorder %v206_v46, 0.0  ;;  %v272_v54 = vmul.f32 %v4270_v40, %v206_v46  ;;  %v221_v55 = vadd.f32 %v3624_v14, %v4260_v38  ;;  %3639 = vmatprep.mubr.msk.f32.mxu1 %vm296_vm1, %v4368_v51  ;;  %v4396_v15 = vld [vmem:[#allocation2 + $0x61] sm:$0xff] }
  0xdc   :  { %3691 = vmatprep.mubr.msk.f32.mxu0 %vm296_vm1, %v4370_v24  ;;  %348 = vst.msk [vmem:[#allocation2 + $0xc1] sm:$0xff] %vm296_vm1, %v289_v53  ;;  %v215_v57 = vpop.f32.mrf.mxu0  ;;  %v4398_v1 = vld [vmem:[#allocation2 + $0x62] sm:$0xff]  ;;  %2796 = vrot.lane.b32.xlu0 %v4410_v10, %s3947_s10 }
  0xdd   :  { %v288_v59 = vsel %vm252_vm12, %v206_v46, %v272_v54  ;;  %vm255_vm13 = vcmp.gt.f32.partialorder %v221_v55, 0.0  ;;  %v275_v60 = vmul.f32 %v4270_v40, %v221_v55  ;;  %v216_v61 = vadd.f32 %v4260_v38, %v215_v57  ;;  %v4387_v62 = vld [vmem:[#allocation2 + $0x51] sm:$0xff]  ;;  %2798 = vrot.lane.b32.xlu1 %v4429_v45, %s3947_s10 }
  0xde   :  { %v4389_v63 = vld [vmem:[#allocation2 + $0x52] sm:$0xff]  ;;  %347 = vst.msk [vmem:[#allocation2 + $0xb1] sm:$0xff] %vm296_vm1, %v288_v59  ;;  %v3627_v0 = vpop.f32.mrf.mxu0  ;;  %3640 = vmatmul.mubr.msk.f32.gmra.mxu1 %vm296_vm1, %v4387_v62 }
  0xdf   :  { %3692 = vmatmul.mubr.msk.f32.gmra.mxu0 %vm296_vm1, %v4389_v63  ;;  %v291_v3 = vsel %vm255_vm13, %v221_v55, %v275_v60  ;;  %vm254_vm14 = vcmp.gt.f32.partialorder %v216_v61, 0.0  ;;  %v274_v4 = vmul.f32 %v4270_v40, %v216_v61  ;;  %v231_v5 = vadd.f32 %v3627_v0, %v4260_v38  ;;  %3642 = vmatprep.mubr.msk.f32.mxu1 %vm296_vm1, %v4396_v15 }
  0xe0   :  { %3694 = vmatprep.mubr.msk.f32.mxu0 %vm296_vm1, %v4398_v1  ;;  %350 = vst.msk [vmem:[#allocation2 + $0xe1] sm:$0xff] %vm296_vm1, %v291_v3  ;;  %v225_v7 = vpop.f32.mrf.mxu0 }
  0xe1   :  { %v290_v11 = vsel %vm254_vm14, %v216_v61, %v274_v4  ;;  %vm257_vm15 = vcmp.gt.f32.partialorder %v231_v5, 0.0  ;;  %v277_v19 = vmul.f32 %v4270_v40, %v231_v5  ;;  %v226_v20 = vadd.f32 %v4260_v38, %v225_v7  ;;  %v4414_v21 = vld [vmem:[#allocation2 + $0x71] sm:$0xff] }
  0xe2   :  { %v4416_v28 = vld [vmem:[#allocation2 + $0x72] sm:$0xff]  ;;  %349 = vst.msk [vmem:[#allocation2 + $0xd1] sm:$0xff] %vm296_vm1, %v290_v11  ;;  %v3630_v31 = vpop.f32.mrf.mxu0  ;;  %3643 = vmatmul.mubr.msk.f32.gmra.mxu1 %vm296_vm1, %v4414_v21  ;;  %v3291_v11 = vld [vmem:[%s5086_s2 + $0x28] sm:$0xff] }
  0xe3   :  { %3695 = vmatmul.mubr.msk.f32.gmra.mxu0 %vm296_vm1, %v4416_v28  ;;  %v293_v33 = vsel %vm257_vm15, %v231_v5, %v277_v19  ;;  %vm256_vm0 = vcmp.gt.f32.partialorder %v226_v20, 0.0  ;;  %v276_v35 = vmul.f32 %v4270_v40, %v226_v20  ;;  %v241_v41 = vadd.f32 %v3630_v31, %v4260_v38  ;;  %3645 = vmatprep.mubr.msk.f32.mxu1 %vm296_vm1, %v380_v8  ;;  %v4444_v17 = vld [vmem:[#allocation2 + $0xc1] sm:$0xff] }
  0xe4   :  { %3697 = vmatprep.mubr.msk.f32.mxu0 %vm296_vm1, %v784_v9  ;;  %352 = vst.msk [vmem:[#allocation2 + $0x101] sm:$0xff] %vm296_vm1, %v293_v33  ;;  %v235_v42 = vpop.f32.mrf.mxu0  ;;  %v4446_v54 = vld [vmem:[#allocation2 + $0xc2] sm:$0xff]  ;;  %v356_v9 = vld [vmem:[#allocation2 + $0x10] sm:$0xff] }
  0xe5   :  { %v292_v23 = vsel %vm256_vm0, %v226_v20, %v276_v35  ;;  %vm259_vm2 = vcmp.gt.f32.partialorder %v241_v41, 0.0  ;;  %v279_v46 = vmul.f32 %v4270_v40, %v241_v41  ;;  %v236_v14 = vadd.f32 %v4260_v38, %v235_v42  ;;  %v4435_v52 = vld [vmem:[#allocation2 + $0xb1] sm:$0xff]  ;;  %v357_v19 = vld [vmem:[#allocation2 + $0x20] sm:$0xff] }
  0xe6   :  { %v4437_v53 = vld [vmem:[#allocation2 + $0xb2] sm:$0xff]  ;;  %351 = vst.msk [vmem:[#allocation2 + $0xf1] sm:$0xff] %vm296_vm1, %v292_v23  ;;  %3646 = vmatmul.mubr.msk.f32.gmra.mxu1 %vm296_vm1, %v4435_v52  ;;  %v3342_v20 = vld [vmem:[%s5086_s2 + $0x40] sm:$0xff] }
  0xe7   :  { %3698 = vmatmul.mubr.msk.f32.gmra.mxu0 %vm296_vm1, %v4437_v53  ;;  %v295_v55 = vsel %vm259_vm2, %v241_v41, %v279_v46  ;;  %vm258_vm3 = vcmp.gt.f32.partialorder %v236_v14, 0.0  ;;  %v278_v38 = vmul.f32 %v4270_v40, %v236_v14  ;;  %3648 = vmatprep.mubr.msk.f32.mxu1 %vm296_vm1, %v4444_v17  ;;  %v4465_v40 = vld [vmem:[#allocation2 + $0xe1] sm:$0xff]  ;;  %v362_v33 = vld [vmem:[#allocation2 + $0x70] sm:$0xff] }
  0xe8   :  { %3700 = vmatprep.mubr.msk.f32.mxu0 %vm296_vm1, %v4446_v54  ;;  %354 = vst.msk [vmem:[#allocation2 + $0x121] sm:$0xff] %vm296_vm1, %v295_v55  ;;  %v4467_v61 = vld [vmem:[#allocation2 + $0xe2] sm:$0xff]  ;;  %v364_v41 = vld [vmem:[#allocation2 + $0xb0] sm:$0xff] }
  0xe9   :  { %v294_v57 = vsel %vm258_vm3, %v236_v14, %v278_v38  ;;  %v4456_v59 = vld [vmem:[#allocation2 + $0xd1] sm:$0xff]  ;;  %v359_v31 = vld [vmem:[#allocation2 + $0x40] sm:$0xff] }
  0xea   :  { %v4458_v60 = vld [vmem:[#allocation2 + $0xd2] sm:$0xff]  ;;  %353 = vst.msk [vmem:[#allocation2 + $0x111] sm:$0xff] %vm296_vm1, %v294_v57  ;;  %3649 = vmatmul.mubr.msk.f32.gmra.mxu1 %vm296_vm1, %v4456_v59  ;;  %v4526_v35 = vld [vmem:[#allocation2 + $0x81] sm:$0xff] }
  0xeb   :  { %3701 = vmatmul.mubr.msk.f32.gmra.mxu0 %vm296_vm1, %v4458_v60  ;;  %3651 = vmatprep.mubr.msk.f32.mxu1 %vm296_vm1, %v4465_v40  ;;  %v4481_v4 = vld [vmem:[#allocation2 + $0x101] sm:$0xff]  ;;  %v366_v23 = vld [vmem:[#allocation2 + $0xd0] sm:$0xff]  ;;  %v3325_v57 = vld [vmem:[%s5086_s2 + $0x38] sm:$0xff] }
  0xec   :  { %3703 = vmatprep.mubr.msk.f32.mxu0 %vm296_vm1, %v4467_v61  ;;  %v4483_v5 = vld [vmem:[#allocation2 + $0x102] sm:$0xff] }
  0xed   :  { %v4473_v0 = vld [vmem:[#allocation2 + $0xf1] sm:$0xff]  ;;  %v365_v42 = vld [vmem:[#allocation2 + $0xc0] sm:$0xff] }
  0xee   :  { %v4475_v3 = vld [vmem:[#allocation2 + $0xf2] sm:$0xff]  ;;  %3652 = vmatmul.mubr.msk.f32.gmra.mxu1 %vm296_vm1, %v4473_v0  ;;  %v367_v46 = vld [vmem:[#allocation2 + $0xe0] sm:$0xff] }
  0xef   :  { %3704 = vmatmul.mubr.msk.f32.gmra.mxu0 %vm296_vm1, %v4475_v3  ;;  %3654 = vmatprep.mubr.msk.f32.mxu1 %vm296_vm1, %v4481_v4  ;;  %v368_v14 = vld [vmem:[#allocation2 + $0xf0] sm:$0xff]  ;;  %v4552_v38 = vld [vmem:[#allocation2 + $0x121] sm:$0xff] }
  0xf0   :  { %3706 = vmatprep.mubr.msk.f32.mxu0 %vm296_vm1, %v4483_v5 }
  0xf1   :  { %v4489_v7 = vld [vmem:[#allocation2 + $0x111] sm:$0xff] }
  0xf2   :  { %v4491_v8 = vld [vmem:[#allocation2 + $0x112] sm:$0xff]  ;;  %3655 = vmatmul.mubr.msk.f32.gmra.mxu1 %vm296_vm1, %v4489_v7 }
  0xf3   :  { %3707 = vmatmul.mubr.msk.f32.gmra.mxu0 %vm296_vm1, %v4491_v8  ;;  %3659 = vmatprep.mubr.msk.f32.mxu1 %vm296_vm1, %v355_v6  ;;  %v370_v55 = vld [vmem:[#allocation2 + $0x110] sm:$0xff]  ;;  %v1691_v6 = vld [vmem:[#allocation2 + $0x80] sm:$0xff] }
  0xf4   :  { %3737 = vmatprep.mubr.msk.f32.mxu0 %vm296_vm1, %v4319_v22  ;;  %v358_v22 = vld [vmem:[#allocation2 + $0x30] sm:$0xff] }
  0xf6   :  { %3660 = vmatmul.mubr.msk.f32.vlgmr.msra.gmra.mxu1 %vm296_vm1, %v356_v9 }
  0xf7   :  { %3738 = vmatmul.mubr.msk.f32.vlgmr.msra.gmra.mxu0 %vm296_vm1, %v4333_v13  ;;  %3710 = vmatpush3.msra.mxu1 %v4326_v27  ;;  %v360_v27 = vld [vmem:[#allocation2 + $0x50] sm:$0xff] }
  0xf8   :  { %3662 = vmatprep.mubr.msk.f32.mxu1 %vm296_vm1, %v357_v19  ;;  %3740 = vmatprep.mubr.msk.f32.mxu0 %vm296_vm1, %v4351_v48 }
  0xf9   :  { %3761 = vmatprep.subr.mxu1 %v3291_v11  ;;  %3788 = vmatpush3.msra.mxu0 %v4359_v50  ;;  %v361_v50 = vld [vmem:[#allocation2 + $0x60] sm:$0xff] }
  0xfa   :  { %3663 = vmatmul.mubr.msk.f32.gmra.mxu1 %vm296_vm1, %v358_v22  ;;  %3839 = vmatprep.subr.mxu0 %v3342_v20 }
  0xfb   :  { %3741 = vmatmul.mubr.msk.f32.gmra.mxu0 %vm296_vm1, %v4368_v51  ;;  %3665 = vmatprep.mubr.msk.f32.mxu1 %vm296_vm1, %v359_v31 }
  0xfc   :  { %3743 = vmatprep.mubr.msk.f32.mxu0 %vm296_vm1, %v4387_v62 }
  0xfe   :  { %3666 = vmatmul.mubr.msk.f32.gmra.mxu1 %vm296_vm1, %v360_v27 }
  0xff   :  { %3744 = vmatmul.mubr.msk.f32.gmra.mxu0 %vm296_vm1, %v4396_v15  ;;  %3668 = vmatprep.mubr.msk.f32.mxu1 %vm296_vm1, %v361_v50 }
 0x100   :  { %3746 = vmatprep.mubr.msk.f32.mxu0 %vm296_vm1, %v4414_v21 }
 0x102   :  { %3669 = vmatmul.mubr.msk.f32.gmra.mxu1 %vm296_vm1, %v362_v33 }
 0x103   :  { %3747 = vmatmul.mubr.msk.f32.gmra.mxu0 %vm296_vm1, %v4526_v35  ;;  %3671 = vmatprep.mubr.msk.f32.mxu1 %vm296_vm1, %v363_v16 }
 0x104   :  { %3749 = vmatprep.mubr.msk.f32.mxu0 %vm296_vm1, %v4435_v52  ;;  %v369_v52 = vld [vmem:[#allocation2 + $0x100] sm:$0xff] }
 0x106   :  { %3672 = vmatmul.mubr.msk.f32.gmra.mxu1 %vm296_vm1, %v364_v41 }
 0x107   :  { %3750 = vmatmul.mubr.msk.f32.gmra.mxu0 %vm296_vm1, %v4444_v17  ;;  %3674 = vmatprep.mubr.msk.f32.mxu1 %vm296_vm1, %v365_v42 }
 0x108   :  { %3752 = vmatprep.mubr.msk.f32.mxu0 %vm296_vm1, %v4456_v59 }
 0x10a   :  { %3675 = vmatmul.mubr.msk.f32.gmra.mxu1 %vm296_vm1, %v366_v23 }
 0x10b   :  { %3753 = vmatmul.mubr.msk.f32.gmra.mxu0 %vm296_vm1, %v4465_v40  ;;  %3677 = vmatprep.mubr.msk.f32.mxu1 %vm296_vm1, %v367_v46 }
 0x10c   :  { %3755 = vmatprep.mubr.msk.f32.mxu0 %vm296_vm1, %v4473_v0 }
 0x10e   :  { %3678 = vmatmul.mubr.msk.f32.gmra.mxu1 %vm296_vm1, %v368_v14 }
 0x10f   :  { %3756 = vmatmul.mubr.msk.f32.gmra.mxu0 %vm296_vm1, %v4481_v4  ;;  %3680 = vmatprep.mubr.msk.f32.mxu1 %vm296_vm1, %v369_v52 }
 0x110   :  { %3758 = vmatprep.mubr.msk.f32.mxu0 %vm296_vm1, %v4489_v7 }
 0x112   :  { %3681 = vmatmul.mubr.msk.f32.gmra.mxu1 %vm296_vm1, %v370_v55 }
 0x113   :  { %3759 = vmatmul.mubr.msk.f32.gmra.mxu0 %vm296_vm1, %v4552_v38  ;;  %3711 = vmatprep.mubr.msk.f32.mxu1 %vm296_vm1, %v356_v9  ;;  %v1692_v9 = vld [vmem:[#allocation2 + $0x90] sm:$0xff] }
 0x114   :  { %3789 = vmatprep.mubr.msk.f32.mxu0 %vm296_vm1, %v357_v19 }
 0x116   :  { %3712 = vmatmul.mubr.msk.f32.vlgmr.msra.gmra.mxu1 %vm296_vm1, %v357_v19  ;;  %v1699_v19 = vld [vmem:[#allocation2 + $0x120] sm:$0xff] }
 0x117   :  { %3790 = vmatmul.mubr.msk.f32.vlgmr.msra.gmra.mxu0 %vm296_vm1, %v358_v22  ;;  %3762 = vmatpush3.msra.mxu1 %v3291_v11  ;;  %v2832_v11 = vlaneseq }
 0x118   :  { %3714 = vmatprep.mubr.msk.f32.mxu1 %vm296_vm1, %v358_v22  ;;  %3792 = vmatprep.mubr.msk.f32.mxu0 %vm296_vm1, %v359_v31 }
 0x119   :  { %3813 = vmatprep.subr.mxu1 %v3325_v57  ;;  %3840 = vmatpush3.msra.mxu0 %v3342_v20  ;;  %v2833_v22 = vshrl.u32 %v2832_v11, 7  ;;  %v2835_v20 = vand.u32 127, %v2832_v11 }
 0x11a   :  { %3715 = vmatmul.mubr.msk.f32.gmra.mxu1 %vm296_vm1, %v359_v31  ;;  %v1700_v31 = vld [vmem:[#allocation2 + $0x130] sm:$0xff] }
 0x11b   :  { %3793 = vmatmul.mubr.msk.f32.gmra.mxu0 %vm296_vm1, %v360_v27  ;;  %3717 = vmatprep.mubr.msk.f32.mxu1 %vm296_vm1, %v360_v27  ;;  %vm2836_vm4 = vcmp.eq.s32.totalorder %v2833_v22, %v2835_v20 }
 0x11c   :  { %3795 = vmatprep.mubr.msk.f32.mxu0 %vm296_vm1, %v361_v50  ;;  %v3379_v27 = vsel %vm2836_vm4, 1.0, %v3946_v18  ;;  %v2145_v18 = vld [vmem:[#allocation2 + $0x82] sm:$0xff] }
 0x11d   :  { %3891 = vmatprep.subr.msk.mxu0 %vm2888_vm5, %v3379_v27 }
 0x11e   :  { %3718 = vmatmul.mubr.msk.f32.gmra.mxu1 %vm296_vm1, %v361_v50 }
 0x11f   :  { %3796 = vmatmul.mubr.msk.f32.gmra.mxu0 %vm296_vm1, %v362_v33  ;;  %3720 = vmatprep.mubr.msk.f32.mxu1 %vm296_vm1, %v362_v33 }
 0x120   :  { %3798 = vmatprep.mubr.msk.f32.mxu0 %vm296_vm1, %v1691_v6 }
 0x122   :  { %3721 = vmatmul.mubr.msk.f32.gmra.mxu1 %vm296_vm1, %v1691_v6 }
 0x123   :  { %3799 = vmatmul.mubr.msk.f32.gmra.mxu0 %vm296_vm1, %v1692_v9  ;;  %3723 = vmatprep.mubr.msk.f32.mxu1 %vm296_vm1, %v364_v41 }
 0x124   :  { %3801 = vmatprep.mubr.msk.f32.mxu0 %vm296_vm1, %v365_v42 }
 0x126   :  { %3724 = vmatmul.mubr.msk.f32.gmra.mxu1 %vm296_vm1, %v365_v42 }
 0x127   :  { %3802 = vmatmul.mubr.msk.f32.gmra.mxu0 %vm296_vm1, %v366_v23  ;;  %3726 = vmatprep.mubr.msk.f32.mxu1 %vm296_vm1, %v366_v23 }
 0x128   :  { %3804 = vmatprep.mubr.msk.f32.mxu0 %vm296_vm1, %v367_v46 }
 0x12a   :  { %3727 = vmatmul.mubr.msk.f32.gmra.mxu1 %vm296_vm1, %v367_v46 }
 0x12b   :  { %3805 = vmatmul.mubr.msk.f32.gmra.mxu0 %vm296_vm1, %v368_v14  ;;  %3729 = vmatprep.mubr.msk.f32.mxu1 %vm296_vm1, %v368_v14 }
 0x12c   :  { %3807 = vmatprep.mubr.msk.f32.mxu0 %vm296_vm1, %v369_v52 }
 0x12e   :  { %3730 = vmatmul.mubr.msk.f32.gmra.mxu1 %vm296_vm1, %v369_v52 }
 0x12f   :  { %3808 = vmatmul.mubr.msk.f32.gmra.mxu0 %vm296_vm1, %v370_v55  ;;  %3732 = vmatprep.mubr.msk.f32.mxu1 %vm296_vm1, %v370_v55 }
 0x130   :  { %3810 = vmatprep.mubr.msk.f32.mxu0 %vm296_vm1, %v1699_v19 }
 0x132   :  { %3733 = vmatmul.mubr.msk.f32.gmra.mxu1 %vm296_vm1, %v1699_v19 }
 0x133   :  { %3811 = vmatmul.mubr.msk.f32.gmra.mxu0 %vm296_vm1, %v1700_v31  ;;  %3763 = vmatprep.mubr.msk.f32.mxu1 %vm296_vm1, %v4321_v25  ;;  %v2146_v25 = vld [vmem:[#allocation2 + $0x92] sm:$0xff] }
 0x134   :  { %3841 = vmatprep.mubr.msk.f32.mxu0 %vm296_vm1, %v4340_v37 }
 0x136   :  { %3764 = vmatmul.mubr.msk.f32.vlgmr.msra.gmra.mxu1 %vm296_vm1, %v4340_v37  ;;  %v2769_v37 = vpop.permute.xlu0 %2768 }
 0x137   :  { %3842 = vmatmul.mubr.msk.f32.vlgmr.msra.gmra.mxu0 %vm296_vm1, %v4353_v49  ;;  %3814 = vmatpush3.msra.mxu1 %v3325_v57 }
 0x138   :  { %3766 = vmatprep.mubr.msk.f32.mxu1 %vm296_vm1, %v4353_v49  ;;  %3844 = vmatprep.mubr.msk.f32.mxu0 %vm296_vm1, %v4370_v24  ;;  %v2771_v49 = vpop.permute.xlu1 %2770 }
 0x139   :  { %3892 = vmatpush3.msk.msra.mxu0 %vm2888_vm5, %v3379_v27 }
 0x13a   :  { %3767 = vmatmul.mubr.msk.f32.gmra.mxu1 %vm296_vm1, %v4370_v24  ;;  %v2773_v24 = vpop.permute.xlu0 %2772 }
 0x13b   :  { %3845 = vmatmul.mubr.msk.f32.gmra.mxu0 %vm296_vm1, %v4389_v63  ;;  %3769 = vmatprep.mubr.msk.f32.mxu1 %vm296_vm1, %v4389_v63 }
 0x13c   :  { %3847 = vmatprep.mubr.msk.f32.mxu0 %vm296_vm1, %v4398_v1  ;;  %v2775_v63 = vpop.permute.xlu1 %2774 }
 0x13e   :  { %3770 = vmatmul.mubr.msk.f32.gmra.mxu1 %vm296_vm1, %v4398_v1  ;;  %v2153_v1 = vld [vmem:[#allocation2 + $0x122] sm:$0xff] }
 0x13f   :  { %3848 = vmatmul.mubr.msk.f32.gmra.mxu0 %vm296_vm1, %v4416_v28  ;;  %3772 = vmatprep.mubr.msk.f32.mxu1 %vm296_vm1, %v4416_v28  ;;  %v2154_v28 = vld [vmem:[#allocation2 + $0x132] sm:$0xff] }
 0x140   :  { %3850 = vmatprep.mubr.msk.f32.mxu0 %vm296_vm1, %v2145_v18 }
 0x142   :  { %3773 = vmatmul.mubr.msk.f32.gmra.mxu1 %vm296_vm1, %v2145_v18 }
 0x143   :  { %3851 = vmatmul.mubr.msk.f32.gmra.mxu0 %vm296_vm1, %v2146_v25  ;;  %3775 = vmatprep.mubr.msk.f32.mxu1 %vm296_vm1, %v4437_v53  ;;  %v2816_v53 = vmax.f32 %v4232_v26, %v2769_v37  ;;  %v2819_v26 = vmax.f32 %v4245_v32, %v2775_v63 }
 0x144   :  { %3853 = vmatprep.mubr.msk.f32.mxu0 %vm296_vm1, %v4446_v54 }
 0x146   :  { %3776 = vmatmul.mubr.msk.f32.gmra.mxu1 %vm296_vm1, %v4446_v54  ;;  %v2777_v54 = vpop.permute.xlu0 %2776 }
 0x147   :  { %3854 = vmatmul.mubr.msk.f32.gmra.mxu0 %vm296_vm1, %v4458_v60  ;;  %3778 = vmatprep.mubr.msk.f32.mxu1 %vm296_vm1, %v4458_v60  ;;  %v2817_v60 = vmax.f32 %v4238_v30, %v2771_v49  ;;  %v2820_v30 = vmax.f32 %v4250_v34, %v2777_v54 }
 0x148   :  { %3856 = vmatprep.mubr.msk.f32.mxu0 %vm296_vm1, %v4467_v61 }
 0x14a   :  { %3779 = vmatmul.mubr.msk.f32.gmra.mxu1 %vm296_vm1, %v4467_v61  ;;  %v2818_v61 = vmax.f32 %v4235_v29, %v2773_v24 }
 0x14b   :  { %3857 = vmatmul.mubr.msk.f32.gmra.mxu0 %vm296_vm1, %v4475_v3  ;;  %3781 = vmatprep.mubr.msk.f32.mxu1 %vm296_vm1, %v4475_v3  ;;  %v2779_v3 = vpop.permute.xlu1 %2778 }
 0x14c   :  { %3859 = vmatprep.mubr.msk.f32.mxu0 %vm296_vm1, %v4483_v5  ;;  %v2821_v29 = vmax.f32 %v4255_v36, %v2779_v3 }
 0x14e   :  { %3782 = vmatmul.mubr.msk.f32.gmra.mxu1 %vm296_vm1, %v4483_v5  ;;  %v2781_v5 = vpop.permute.xlu0 %2780 }
 0x14f   :  { %3860 = vmatmul.mubr.msk.f32.gmra.mxu0 %vm296_vm1, %v4491_v8  ;;  %3784 = vmatprep.mubr.msk.f32.mxu1 %vm296_vm1, %v4491_v8  ;;  %v2822_v32 = vmax.f32 %v4265_v39, %v2781_v5 }
 0x150   :  { %3862 = vmatprep.mubr.msk.f32.mxu0 %vm296_vm1, %v2153_v1 }
 0x152   :  { %3785 = vmatmul.mubr.msk.f32.gmra.mxu1 %vm296_vm1, %v2153_v1 }
 0x153   :  { %3863 = vmatmul.mubr.msk.f32.gmra.mxu0 %vm296_vm1, %v2154_v28  ;;  %3815 = vmatprep.mubr.msk.f32.mxu1 %vm296_vm1, %v4333_v13  ;;  %v2783_v13 = vpop.permute.xlu1 %2782 }
 0x154   :  { %3893 = vmatprep.mubr.msk.f32.mxu0 %vm2839_vm6, %v2816_v53  ;;  %v2823_v34 = vmax.f32 %v4276_v44, %v2783_v13 }
 0x156   :  { %3816 = vmatmul.mubr.msk.f32.vlgmr.msra.gmra.mxu1 %vm296_vm1, %v4351_v48  ;;  %v2785_v48 = vpop.permute.xlu0 %2784 }
 0x157   :  { %3894 = vmatmul.mubr.msk.f32.vlgmr.msra.gmra.mxu0 %vm2839_vm6, %v2817_v60  ;;  %3818 = vmatprep.mubr.msk.f32.mxu1 %vm296_vm1, %v4368_v51  ;;  %v1919_v51 = vld [vmem:[#allocation2 + $0x91] sm:$0xff]  ;;  %v2824_v36 = vmax.f32 %v4281_v47, %v2785_v48 }
 0x158   :  { %3896 = vmatprep.mubr.msk.f32.mxu0 %vm2839_vm6, %v2818_v61 }
 0x15a   :  { %3819 = vmatmul.mubr.msk.f32.gmra.mxu1 %vm296_vm1, %v4387_v62  ;;  %v2787_v62 = vpop.permute.xlu1 %2786 }
 0x15b   :  { %3897 = vmatmul.mubr.msk.f32.gmra.mxu0 %vm2839_vm6, %v2819_v26  ;;  %3821 = vmatprep.mubr.msk.f32.mxu1 %vm296_vm1, %v4396_v15  ;;  %v2789_v15 = vpop.permute.xlu0 %2788  ;;  %v2825_v39 = vmax.f32 %v4291_v56, %v2787_v62 }
 0x15c   :  { %3899 = vmatprep.mubr.msk.f32.mxu0 %vm2839_vm6, %v2820_v30  ;;  %v2826_v44 = vmax.f32 %v4304_v2, %v2789_v15 }
 0x15e   :  { %3822 = vmatmul.mubr.msk.f32.gmra.mxu1 %vm296_vm1, %v4414_v21  ;;  %v2791_v21 = vpop.permute.xlu1 %2790 }
 0x15f   :  { %3900 = vmatmul.mubr.msk.f32.gmra.mxu0 %vm2839_vm6, %v2821_v29  ;;  %3824 = vmatprep.mubr.msk.f32.mxu1 %vm296_vm1, %v4526_v35  ;;  %v2793_v8 = vpop.permute.xlu0 %2792  ;;  %v2827_v47 = vmax.f32 %v4315_v12, %v2791_v21 }
 0x160   :  { %3902 = vmatprep.mubr.msk.f32.mxu0 %vm2839_vm6, %v2822_v32  ;;  %v2828_v56 = vmax.f32 %v4347_v43, %v2793_v8 }
 0x162   :  { %3825 = vmatmul.mubr.msk.f32.gmra.mxu1 %vm296_vm1, %v1919_v51 }
 0x163   :  { %3903 = vmatmul.mubr.msk.f32.gmra.mxu0 %vm2839_vm6, %v2823_v34  ;;  %3827 = vmatprep.mubr.msk.f32.mxu1 %vm296_vm1, %v4444_v17  ;;  %v2795_v17 = vpop.permute.xlu1 %2794  ;;  %v2797_v50 = vpop.permute.xlu0 %2796 }
 0x164   :  { %3905 = vmatprep.mubr.msk.f32.mxu0 %vm2839_vm6, %v2824_v36  ;;  %v2829_v2 = vmax.f32 %v4381_v58, %v2795_v17  ;;  %v2830_v12 = vmax.f32 %v4410_v10, %v2797_v50  ;;  %v2438_v58 = vld [vmem:[%s5087_s3] sm:$0xff] }
 0x165   :  { %3865 = vmatprep.subr.mxu1 %v2438_v58 }
 0x166   :  { %3828 = vmatmul.mubr.msk.f32.gmra.mxu1 %vm296_vm1, %v4456_v59 }
 0x167   :  { %3906 = vmatmul.mubr.msk.f32.gmra.mxu0 %vm2839_vm6, %v2825_v39  ;;  %3830 = vmatprep.mubr.msk.f32.mxu1 %vm296_vm1, %v4465_v40  ;;  %v2799_v59 = vpop.permute.xlu1 %2798  ;;  %v1927_v40 = vld [vmem:[#allocation2 + $0x131] sm:$0xff] }
 0x168   :  { %3908 = vmatprep.mubr.msk.f32.mxu0 %vm2839_vm6, %v2826_v44  ;;  %v2831_v43 = vmax.f32 %v4429_v45, %v2799_v59  ;;  %3866 = vmatpush3.msra.mxu1 %v2438_v58 }
 0x16a   :  { %3831 = vmatmul.mubr.msk.f32.gmra.mxu1 %vm296_vm1, %v4473_v0 }
 0x16b   :  { %3909 = vmatmul.mubr.msk.f32.gmra.mxu0 %vm2839_vm6, %v2827_v47  ;;  %3833 = vmatprep.mubr.msk.f32.mxu1 %vm296_vm1, %v4481_v4 }
 0x16c   :  { %3911 = vmatprep.mubr.msk.f32.mxu0 %vm2839_vm6, %v2828_v56 }
 0x16e   :  { %3834 = vmatmul.mubr.msk.f32.gmra.mxu1 %vm296_vm1, %v4489_v7 }
 0x16f   :  { %3912 = vmatmul.mubr.msk.f32.gmra.mxu0 %vm2839_vm6, %v2829_v2  ;;  %3836 = vmatprep.mubr.msk.f32.mxu1 %vm296_vm1, %v4552_v38 }
 0x170   :  { %3914 = vmatprep.mubr.msk.f32.mxu0 %vm2839_vm6, %v2830_v12 }
 0x172   :  { %3837 = vmatmul.mubr.msk.f32.gmra.mxu1 %vm296_vm1, %v1927_v40 }
 0x173   :  { %3915 = vmatmul.mubr.msk.f32.gmra.mxu0 %vm2839_vm6, %v2831_v43 }
 0x196   :  { %v3635_v10 = vpop.f32.mrf.mxu1 }
 0x197   :  { %v3687_v0 = vpop.f32.mrf.mxu0 }
 0x198   :  { %v504_v4 = vpop.f32.mrf.mxu1 }
 0x199   :  { %v908_v45 = vpop.f32.mrf.mxu0 }
 0x19a   :  { %v3638_v7 = vpop.f32.mrf.mxu1 }
 0x19b   :  { %v3690_v16 = vpop.f32.mrf.mxu0 }
 0x19c   :  { %v514_v33 = vpop.f32.mrf.mxu1 }
 0x19d   :  { %v918_v35 = vpop.f32.mrf.mxu0 }
 0x19e   :  { %v3641_v41 = vpop.f32.mrf.mxu1 }
 0x19f   :  { %v3693_v42 = vpop.f32.mrf.mxu0 }
 0x1a0   :  { %v524_v23 = vpop.f32.mrf.mxu1 }
 0x1a1   :  { %v928_v46 = vpop.f32.mrf.mxu0 }
 0x1a2   :  { %v3644_v14 = vpop.f32.mrf.mxu1 }
 0x1a3   :  { %v3696_v52 = vpop.f32.mrf.mxu0 }
 0x1a4   :  { %v534_v55 = vpop.f32.mrf.mxu1 }
 0x1a5   :  { %v938_v38 = vpop.f32.mrf.mxu0 }
 0x1a6   :  { %v3647_v57 = vpop.f32.mrf.mxu1 }
 0x1a7   :  { %v3699_v6 = vpop.f32.mrf.mxu0 }
 0x1a8   :  { %v544_v9 = vpop.f32.mrf.mxu1 }
 0x1a9   :  { %v948_v11 = vpop.f32.mrf.mxu0 }
 0x1aa   :  { %v3650_v19 = vpop.f32.mrf.mxu1 }
 0x1ab   :  { %v3702_v22 = vpop.f32.mrf.mxu0 }
 0x1ac   :  { %v554_v20 = vpop.f32.mrf.mxu1 }
 0x1ad   :  { %v958_v31 = vpop.f32.mrf.mxu0 }
 0x1ae   :  { %v3653_v27 = vpop.f32.mrf.mxu1 }
 0x1af   :  { %v3705_v18 = vpop.f32.mrf.mxu0 }
 0x1b0   :  { %v564_v25 = vpop.f32.mrf.mxu1 }
 0x1b1   :  { %v4716_v37 = vpop.f32.mrf.mxu0 }
 0x1b2   :  { %v3656_v49 = vpop.f32.mrf.mxu1 }
 0x1b3   :  { %v4718_v24 = vpop.f32.mrf.mxu0 }
 0x1b4   :  { %v4720_v63 = vpop.f32.mrf.mxu1 }
 0x1b5   :  { %v4722_v1 = vpop.f32.mrf.mxu0 }
 0x1b6   :  { %v3661_v28 = vpop.f32.mrf.mxu1 }
 0x1b7   :  { %v4724_v53 = vpop.f32.mrf.mxu0  ;;  %v703_v54 = vadd.f32 %v3661_v28, %v3635_v10 }
 0x1b8   :  { %v697_v60 = vpop.f32.mrf.mxu1 }
 0x1b9   :  { %v4726_v61 = vpop.f32.mrf.mxu0  ;;  %v698_v3 = vadd.f32 %v697_v60, %v504_v4  ;;  %v4728_v26 = vadd.f32 %v3687_v0, %v703_v54 }
 0x1ba   :  { %v3664_v5 = vpop.f32.mrf.mxu1 }
 0x1bb   :  { %v4730_v30 = vpop.f32.mrf.mxu0  ;;  %v713_v13 = vadd.f32 %v3664_v5, %v3638_v7  ;;  %v4732_v29 = vadd.f32 %v908_v45, %v698_v3 }
 0x1bc   :  { %v707_v32 = vpop.f32.mrf.mxu1 }
 0x1bd   :  { %v4734_v48 = vpop.f32.mrf.mxu0  ;;  %v708_v34 = vadd.f32 %v707_v32, %v514_v33  ;;  %v4736_v51 = vadd.f32 %v3690_v16, %v713_v13 }
 0x1be   :  { %v3667_v36 = vpop.f32.mrf.mxu1 }
 0x1bf   :  { %v4738_v62 = vpop.f32.mrf.mxu0  ;;  %v723_v15 = vadd.f32 %v3667_v36, %v3641_v41  ;;  %v4740_v39 = vadd.f32 %v918_v35, %v708_v34 }
 0x1c0   :  { %v717_v44 = vpop.f32.mrf.mxu1 }
 0x1c1   :  { %v4742_v21 = vpop.f32.mrf.mxu0  ;;  %v718_v8 = vadd.f32 %v717_v44, %v524_v23  ;;  %v4744_v47 = vadd.f32 %v3693_v42, %v723_v15 }
 0x1c2   :  { %v3670_v56 = vpop.f32.mrf.mxu1 }
 0x1c3   :  { %v4746_v17 = vpop.f32.mrf.mxu0  ;;  %v733_v50 = vadd.f32 %v3670_v56, %v3644_v14  ;;  %v4748_v2 = vadd.f32 %v928_v46, %v718_v8 }
 0x1c4   :  { %v727_v12 = vpop.f32.mrf.mxu1 }
 0x1c5   :  { %v4750_v59 = vpop.f32.mrf.mxu0  ;;  %v728_v43 = vadd.f32 %v727_v12, %v534_v55  ;;  %v4752_v40 = vadd.f32 %v3696_v52, %v733_v50 }
 0x1c6   :  { %v3673_v58 = vpop.f32.mrf.mxu1 }
 0x1c7   :  { %v4754_v10 = vpop.f32.mrf.mxu0  ;;  %v743_v0 = vadd.f32 %v3673_v58, %v3647_v57  ;;  %v4756_v4 = vadd.f32 %v938_v38, %v728_v43 }
 0x1c8   :  { %v737_v45 = vpop.f32.mrf.mxu1 }
 0x1c9   :  { %v4758_v7 = vpop.f32.mrf.mxu0  ;;  %v738_v16 = vadd.f32 %v737_v45, %v544_v9  ;;  %v4760_v33 = vadd.f32 %v3699_v6, %v743_v0 }
 0x1ca   :  { %v3676_v35 = vpop.f32.mrf.mxu1 }
 0x1cb   :  { %v4762_v41 = vpop.f32.mrf.mxu0  ;;  %v753_v42 = vadd.f32 %v3676_v35, %v3650_v19  ;;  %v4764_v23 = vadd.f32 %v948_v11, %v738_v16 }
 0x1cc   :  { %v747_v46 = vpop.f32.mrf.mxu1 }
 0x1cd   :  { %v4766_v14 = vpop.f32.mrf.mxu0  ;;  %v748_v52 = vadd.f32 %v747_v46, %v554_v20  ;;  %v4768_v55 = vadd.f32 %v3702_v22, %v753_v42 }
 0x1ce   :  { %v3679_v38 = vpop.f32.mrf.mxu1 }
 0x1cf   :  { %v4770_v57 = vpop.f32.mrf.mxu0  ;;  %v763_v28 = vadd.f32 %v3679_v38, %v3653_v27  ;;  %v4772_v54 = vadd.f32 %v958_v31, %v748_v52 }
 0x1d0   :  { %v757_v6 = vpop.f32.mrf.mxu1 }
 0x1d1   :  { %v4774_v9 = vpop.f32.mrf.mxu0  ;;  %v758_v60 = vadd.f32 %v757_v6, %v564_v25  ;;  %v4776_v3 = vadd.f32 %v3705_v18, %v763_v28 }
 0x1d2   :  { %5090 = vst [vmem:[#allocation6_spill] sm:$0xff] %v4774_v9  ;;  %v3682_v11 = vpop.f32.mrf.mxu1 }
 0x1d3   :  { %v4778_v19 = vpop.f32.mrf.mxu0  ;;  %v773_v5 = vadd.f32 %v3682_v11, %v3656_v49  ;;  %v4781_v20 = vadd.f32 %v4716_v37, %v758_v60 }
 0x1d4   :  { %5091 = vst [vmem:[#allocation7_spill] sm:$0xff] %v4778_v19  ;;  %v767_v22 = vpop.f32.mrf.mxu1 }
 0x1d5   :  { %v4783_v13 = vpop.f32.mrf.mxu0  ;;  %v768_v27 = vadd.f32 %v767_v22, %v4720_v63  ;;  %v4787_v31 = vadd.f32 %v4718_v24, %v773_v5 }
 0x1d6   :  { %5092 = vst [vmem:[#allocation8_spill] sm:$0xff] %v4783_v13  ;;  %v3713_v32 = vpop.f32.mrf.mxu1 }
 0x1d7   :  { %v4789_v34 = vpop.f32.mrf.mxu0  ;;  %v4792_v18 = vadd.f32 %v4722_v1, %v768_v27 }
 0x1d8   :  { %v1135_v25 = vpop.f32.mrf.mxu1 }
 0x1d9   :  { %5093 = vst [vmem:[#allocation9_spill] sm:$0xff] %v4792_v18  ;;  %v4794_v36 = vpop.f32.mrf.mxu0 }
 0x1da   :  { %v3716_v49 = vpop.f32.mrf.mxu1 }
 0x1db   :  { %v4796_v37 = vpop.f32.mrf.mxu0 }
 0x1dc   :  { %v1145_v15 = vpop.f32.mrf.mxu1 }
 0x1dd   :  { %v4798_v44 = vpop.f32.mrf.mxu0 }
 0x1de   :  { %5094 = vst [vmem:[#allocation10_spill] sm:$0xff] %v4798_v44  ;;  %v3719_v8 = vpop.f32.mrf.mxu1 }
 0x1df   :  { %v4800_v63 = vpop.f32.mrf.mxu0 }
 0x1e0   :  { %5095 = vst [vmem:[#allocation11_spill] sm:$0xff] %v4800_v63  ;;  %v1155_v24 = vpop.f32.mrf.mxu1 }
 0x1e1   :  { %v4802_v56 = vpop.f32.mrf.mxu0 }
 0x1e2   :  { %5096 = vst [vmem:[#allocation12_spill] sm:$0xff] %v4802_v56  ;;  %v3722_v50 = vpop.f32.mrf.mxu1 }
 0x1e3   :  { %v4804_v12 = vpop.f32.mrf.mxu0 }
 0x1e4   :  { %5097 = vst [vmem:[#allocation13_spill] sm:$0xff] %v4804_v12  ;;  %v1165_v1 = vpop.f32.mrf.mxu1 }
 0x1e5   :  { %v4806_v43 = vpop.f32.mrf.mxu0 }
 0x1e6   :  { %5098 = vst [vmem:[#allocation14_spill] sm:$0xff] %v4806_v43  ;;  %v3725_v58 = vpop.f32.mrf.mxu1 }
 0x1e7   :  { %v4808_v0 = vpop.f32.mrf.mxu0 }
 0x1e8   :  { %5099 = vst [vmem:[#allocation15_spill] sm:$0xff] %v4808_v0  ;;  %v1175_v45 = vpop.f32.mrf.mxu1 }
 0x1e9   :  { %v4810_v16 = vpop.f32.mrf.mxu0 }
 0x1ea   :  { %5100 = vst [vmem:[#allocation16_spill] sm:$0xff] %v4810_v16  ;;  %v3728_v35 = vpop.f32.mrf.mxu1 }
 0x1eb   :  { %v4812_v42 = vpop.f32.mrf.mxu0 }
 0x1ec   :  { %5101 = vst [vmem:[#allocation17_spill] sm:$0xff] %v4812_v42  ;;  %v1185_v46 = vpop.f32.mrf.mxu1 }
 0x1ed   :  { %v4814_v52 = vpop.f32.mrf.mxu0 }
 0x1ee   :  { %5102 = vst [vmem:[#allocation18_spill] sm:$0xff] %v4814_v52  ;;  %v3731_v38 = vpop.f32.mrf.mxu1 }
 0x1ef   :  { %v4816_v28 = vpop.f32.mrf.mxu0 }
 0x1f0   :  { %5103 = vst [vmem:[#allocation19_spill] sm:$0xff] %v4816_v28  ;;  %v1195_v6 = vpop.f32.mrf.mxu1 }
 0x1f1   :  { %v4818_v60 = vpop.f32.mrf.mxu0 }
 0x1f2   :  { %5104 = vst [vmem:[#allocation20_spill] sm:$0xff] %v4818_v60  ;;  %v3734_v11 = vpop.f32.mrf.mxu1 }
 0x1f3   :  { %v4820_v5 = vpop.f32.mrf.mxu0 }
 0x1f4   :  { %5105 = vst [vmem:[#allocation21_spill] sm:$0xff] %v4820_v5  ;;  %v4822_v22 = vpop.f32.mrf.mxu1 }
 0x1f5   :  { %5106 = vst [vmem:[#allocation22_spill] sm:$0xff] %v4822_v22  ;;  %v4824_v27 = vpop.f32.mrf.mxu0 }
 0x1f6   :  { %5107 = vst [vmem:[#allocation23_spill] sm:$0xff] %v4824_v27  ;;  %v3765_v16 = vpop.f32.mrf.mxu1 }
 0x1f7   :  { %v3843_v43 = vpop.f32.mrf.mxu0 }
 0x1f8   :  { %v1589_v0 = vpop.f32.mrf.mxu1 }
 0x1f9   :  { %v4826_v13 = vpop.f32.mrf.mxu0 }
 0x1fa   :  { %v3768_v42 = vpop.f32.mrf.mxu1  ;;  %5108 = vst [vmem:[#allocation24_spill] sm:$0xff] %v4826_v13  ;;  %v1215_v13 = vadd.f32 %v3713_v32, %v4728_v26  ;;  %v1218_v26 = vadd.f32 %v1155_v24, %v4748_v2  ;;  %v1221_v32 = vadd.f32 %v3722_v50, %v4752_v40 }
 0x1fb   :  { %v4828_v28 = vpop.f32.mrf.mxu0 }
 0x1fc   :  { %v1599_v12 = vpop.f32.mrf.mxu1  ;;  %5109 = vst [vmem:[#allocation25_spill] sm:$0xff] %v4828_v28  ;;  %v1214_v28 = vadd.f32 %v1135_v25, %v4732_v29 }
 0x1fd   :  { %v4834_v5 = vpop.f32.mrf.mxu0 }
 0x1fe   :  { %v3771_v52 = vpop.f32.mrf.mxu1  ;;  %5112 = vst [vmem:[#allocation28_spill] sm:$0xff] %v4834_v5  ;;  %v1217_v5 = vadd.f32 %v3716_v49, %v4736_v51  ;;  %v1441_v29 = vadd.f32 %v4726_v61, %v1214_v28  ;;  %v1220_v51 = vadd.f32 %v1165_v1, %v4756_v4  ;;  %v5124_v28 = vld [vmem:[#allocation10_spill] sm:$0xff] }
 0x1ff   :  { %v4840_v19 = vpop.f32.mrf.mxu0 }
 0x200   :  { %v1609_v56 = vpop.f32.mrf.mxu1  ;;  %5115 = vst [vmem:[#allocation31_spill] sm:$0xff] %v4840_v19  ;;  %v1219_v19 = vadd.f32 %v3719_v8, %v4744_v47  ;;  %v1444_v47 = vadd.f32 %v4730_v30, %v1217_v5  ;;  %v1224_v8 = vadd.f32 %v1185_v46, %v4772_v54  ;;  %v1227_v30 = vadd.f32 %v3731_v38, %v4776_v3  ;;  %v4890_v3 = vld [vmem:[%s5088_s4 + $0x1] ss:$0 sm:$0xff]  ;;  %v5125_v5 = vld [vmem:[#allocation11_spill] sm:$0xff] }
 0x201   :  { %v4848_v9 = vpop.f32.mrf.mxu0 }
 0x202   :  { %v4830_v63 = vpop.f32.mrf.mxu1  ;;  %v1446_v40 = vadd.f32 %v4738_v62, %v1219_v19  ;;  %v1671_v61 = vadd.f32 %v3768_v42, %v1444_v47  ;;  %v1447_v19 = vadd.f32 %v4750_v59, %v1220_v51 }
 0x203   :  { %5110 = vst [vmem:[#allocation26_spill] sm:$0xff] %v4830_v63  ;;  %v4861_v25 = vpop.f32.mrf.mxu0  ;;  %v5127_v51 = vld [vmem:[#allocation25_spill] sm:$0xff] }
 0x204   :  { %v4832_v60 = vpop.f32.mrf.mxu1 }
 0x205   :  { %5111 = vst [vmem:[#allocation27_spill] sm:$0xff] %v4832_v60 }
 0x206   :  { %v4836_v44 = vpop.f32.mrf.mxu1 }
 0x207   :  { %5113 = vst [vmem:[#allocation29_spill] sm:$0xff] %v4836_v44  ;;  %v1442_v44 = vadd.f32 %v4724_v53, %v1215_v13  ;;  %v1223_v53 = vadd.f32 %v3725_v58, %v4760_v33  ;;  %v1222_v13 = vadd.f32 %v1175_v45, %v4764_v23  ;;  %v1225_v33 = vadd.f32 %v3728_v35, %v4768_v55  ;;  %v5120_v35 = vld [vmem:[#allocation22_spill] sm:$0xff] }
 0x208   :  { %v4838_v27 = vpop.f32.mrf.mxu1  ;;  %v1226_v23 = vadd.f32 %v1195_v6, %v4781_v20  ;;  %v1673_v55 = vadd.f32 %v3771_v52, %v1446_v40  ;;  %v5123_v52 = vld [vmem:[#allocation7_spill] sm:$0xff] }
 0x209   :  { %5114 = vst [vmem:[#allocation30_spill] sm:$0xff] %v4838_v27  ;;  %v1216_v27 = vadd.f32 %v1145_v15, %v4740_v39  ;;  %v1668_v39 = vadd.f32 %v1589_v0, %v1441_v29  ;;  %v1445_v15 = vadd.f32 %v4742_v21, %v1218_v26  ;;  %v1450_v24 = vadd.f32 %v4754_v10, %v1223_v53 }
 0x20a   :  { %v4842_v22 = vpop.f32.mrf.mxu1  ;;  %v1449_v54 = vadd.f32 %v4758_v7, %v1222_v13  ;;  %v1899_v10 = vadd.f32 %v4796_v37, %v1671_v61  ;;  %v5118_v7 = vld [vmem:[#allocation6_spill] sm:$0xff]  ;;  %v4908_v37 = vld [vmem:[%s5088_s4 + $0x4] ss:$0 sm:$0xff] }
 0x20b   :  { %v1443_v2 = vadd.f32 %v4734_v48, %v1216_v27  ;;  %v4880_v48 = vpop.f32.mrf.mxu0  ;;  %v1672_v50 = vadd.f32 %v1609_v56, %v1445_v15  ;;  %v4901_v0 = vadd.f32 %v5118_v7, %v1226_v23  ;;  %v5122_v46 = vld [vmem:[#allocation26_spill] sm:$0xff]  ;;  %v1901_v27 = vadd.f32 %v5125_v5, %v1673_v55  ;;  %v5134_v55 = vld [vmem:[#allocation31_spill] sm:$0xff] }
 0x20c   :  { %v4845_v18 = vpop.f32.mrf.mxu1  ;;  %v5126_v26 = vld [vmem:[#allocation27_spill] sm:$0xff] }
 0x20d   :  { %5116 = vst [vmem:[#allocation32_spill] sm:$0xff] %v4845_v18  ;;  %v1669_v18 = vadd.f32 %v3765_v16, %v1442_v44  ;;  %v1448_v44 = vadd.f32 %v4746_v17, %v1221_v32  ;;  %v1896_v17 = vadd.f32 %v4794_v36, %v1668_v39  ;;  %v4893_v58 = vpop.f32.mrf.mxu0  ;;  %v1452_v36 = vadd.f32 %v4762_v41, %v1225_v33  ;;  %v5119_v16 = vld [vmem:[#allocation9_spill] sm:$0xff]  ;;  %v5121_v41 = vld [vmem:[#allocation24_spill] sm:$0xff] }
 0x20e   :  { %v4850_v63 = vpop.f32.mrf.mxu1  ;;  %v1228_v56 = vadd.f32 %v5120_v35, %v5119_v16  ;;  %v1674_v32 = vadd.f32 %v5126_v26, %v1447_v19  ;;  %v5128_v39 = vld [vmem:[#allocation12_spill] sm:$0xff]  ;;  %v5129_v13 = vld [vmem:[#allocation29_spill] sm:$0xff]  ;;  %v5136_v35 = vld [vmem:[#allocation15_spill] sm:$0xff] }
 0x20f   :  { %5117 = vst [vmem:[#allocation33_spill] sm:$0xff] %v4850_v63  ;;  %v1897_v4 = vadd.f32 %v4789_v34, %v1669_v18  ;;  %v1229_v34 = vadd.f32 %v3734_v11, %v4787_v31  ;;  %v1670_v18 = vadd.f32 %v1599_v12, %v1443_v2  ;;  %v1451_v31 = vadd.f32 %v4766_v14, %v1224_v8  ;;  %v4923_v40 = vpop.f32.mrf.mxu0 }
 0x210   :  { %v4856_v60 = vpop.f32.mrf.mxu1  ;;  %v4898_v12 = vadd.f32 %v4770_v57, %v1227_v30  ;;  %v1675_v57 = vadd.f32 %v5122_v46, %v1448_v44  ;;  %v1900_v47 = vadd.f32 %v5128_v39, %v1672_v50  ;;  %v1677_v2 = vadd.f32 %v5129_v13, %v1450_v24  ;;  %v5130_v30 = vld [vmem:[#allocation30_spill] sm:$0xff] }
 0x211   :  { %v4914_v38 = vadd.f32 %v5123_v52, %v1229_v34  ;;  %v1898_v6 = vadd.f32 %v5124_v28, %v1670_v18  ;;  %v1676_v23 = vadd.f32 %v5130_v30, %v1449_v54  ;;  %v5133_v34 = vld [vmem:[#allocation13_spill] sm:$0xff]  ;;  %v3858_v7 = vpop.f32.mrf.mxu0 }
 0x212   :  { %v4863_v63 = vpop.f32.mrf.mxu1  ;;  %v1903_v18 = vadd.f32 %v5133_v34, %v1675_v57  ;;  %v1679_v57 = vadd.f32 %v4842_v22, %v1452_v36 }
 0x214   :  { %v4871_v49 = vpop.f32.mrf.mxu1 }
 0x216   :  { %v3817_v62 = vpop.f32.mrf.mxu1 }
 0x217   :  { %v2124_v21 = vadd.f32 %v3817_v62, %v1897_v4  ;;  %v5131_v62 = vld [vmem:[#allocation8_spill] sm:$0xff] }
 0x218   :  { %v2044_v20 = vpop.f32.mrf.mxu1  ;;  %v4930_v19 = vadd.f32 %v5131_v62, %v1228_v56  ;;  %v1905_v56 = vadd.f32 %v5136_v35, %v1677_v2 }
 0x219   :  { %v2351_v1 = vadd.f32 %v3843_v43, %v2124_v21  ;;  %v2123_v59 = vadd.f32 %v2044_v20, %v1896_v17  ;;  %v5132_v21 = vld [vmem:[#allocation28_spill] sm:$0xff] }
 0x21a   :  { %v3820_v45 = vpop.f32.mrf.mxu1 }
 0x21b   :  { %v2371_v43 = vadd.f32 %v4890_v3, %v2351_v1  ;;  %v2350_v42 = vadd.f32 %v5121_v41, %v2123_v59  ;;  %v2126_v14 = vadd.f32 %v3820_v45, %v1899_v10  ;;  %v5135_v59 = vld [vmem:[#allocation14_spill] sm:$0xff] }
 0x21c   :  { %v2054_v11 = vpop.f32.mrf.mxu1  ;;  %v1902_v10 = vadd.f32 %v5135_v59, %v1674_v32  ;;  %v1682_v59 = vadd.f32 %v4871_v49, %v4930_v19  ;;  %v5144_v19 = vld [vmem:[#allocation21_spill] sm:$0xff] }
 0x21d   :  { %v2370_v29 = vadd.f32 %v4890_v3, %v2350_v42  ;;  %v2353_v53 = vadd.f32 %v5127_v51, %v2126_v14  ;;  %vm2387_vm7 = vcmp.gt.f32.partialorder %v2371_v43, 0.0  ;;  %v2407_v61 = vmul.f32 %v4908_v37, %v2371_v43 }
 0x21e   :  { %v2125_v15 = vadd.f32 %v2054_v11, %v1898_v6  ;;  %v3823_v44 = vpop.f32.mrf.mxu1  ;;  %v5137_v6 = vld [vmem:[#allocation16_spill] sm:$0xff] }
 0x21f   :  { %v2373_v4 = vadd.f32 %v4890_v3, %v2353_v53  ;;  %v2128_v33 = vadd.f32 %v3823_v44, %v1901_v27  ;;  %vm2386_vm8 = vcmp.gt.f32.partialorder %v2370_v29, 0.0  ;;  %v2406_v8 = vmul.f32 %v4908_v37, %v2370_v29  ;;  %v5138_v11 = vld [vmem:[#allocation32_spill] sm:$0xff] }
 0x220   :  { %v2352_v24 = vadd.f32 %v5132_v21, %v2125_v15  ;;  %v2064_v17 = vpop.f32.mrf.mxu1  ;;  %v2423_v54 = vsel %vm2387_vm7, %v2371_v43, %v2407_v61  ;;  %v1904_v43 = vadd.f32 %v5137_v6, %v1676_v23  ;;  %v1678_v5 = vadd.f32 %v5138_v11, %v1451_v31  ;;  %v5139_v31 = vld [vmem:[#allocation33_spill] sm:$0xff]  ;;  %v5145_v6 = vld [vmem:[#allocation23_spill] sm:$0xff] }
 0x221   :  { %v2355_v20 = vadd.f32 %v5134_v55, %v2128_v33  ;;  %v2127_v50 = vadd.f32 %v2064_v17, %v1900_v47  ;;  %v2422_v1 = vsel %vm2386_vm8, %v2370_v29, %v2406_v8  ;;  %v2409_v41 = vmul.f32 %v4908_v37, %v2373_v4  ;;  %v5140_v61 = vld [vmem:[#allocation17_spill] sm:$0xff]  ;;  %v5141_v8 = vld [vmem:[#allocation18_spill] sm:$0xff] }
 0x222   :  { %v2372_v45 = vadd.f32 %v4890_v3, %v2352_v24  ;;  %v3826_v16 = vpop.f32.mrf.mxu1  ;;  %3867 = vmatprep.mubr.msk.f32.mxu1 %vm296_vm1, %v2422_v1  ;;  %vm2389_vm9 = vcmp.gt.f32.partialorder %v2373_v4, 0.0  ;;  %v1681_v13 = vadd.f32 %v5139_v31, %v4898_v12  ;;  %v1907_v15 = vadd.f32 %v5140_v61, %v1679_v57 }
 0x223   :  { %v2375_v42 = vadd.f32 %v4890_v3, %v2355_v20  ;;  %v2354_v14 = vadd.f32 %v4848_v9, %v2127_v50  ;;  %v2130_v46 = vadd.f32 %v3826_v16, %v1903_v18  ;;  %3868 = vmatmul.mubr.msk.f32.vlgmr.msra.gmra.mxu1 %vm296_vm1, %v2423_v54  ;;  %v2321_v9 = vpop.f32.mrf.mxu0  ;;  %v2425_v53 = vsel %vm2389_vm9, %v2373_v4, %v2409_v41  ;;  %v5142_v18 = vld [vmem:[#allocation19_spill] sm:$0xff]  ;;  %v5143_v50 = vld [vmem:[#allocation20_spill] sm:$0xff] }
 0x224   :  { %v2074_v52 = vpop.f32.mrf.mxu1  ;;  %vm2388_vm10 = vcmp.gt.f32.partialorder %v2372_v45, 0.0  ;;  %v2408_v28 = vmul.f32 %v4908_v37, %v2372_v45  ;;  %v1906_v30 = vadd.f32 %v5141_v8, %v1678_v5  ;;  %v1909_v55 = vadd.f32 %v5142_v18, %v1681_v13 }
 0x225   :  { %v2374_v27 = vadd.f32 %v4890_v3, %v2354_v14  ;;  %v2357_v26 = vadd.f32 %v4861_v25, %v2130_v46  ;;  %v2129_v32 = vadd.f32 %v2074_v52, %v1902_v10  ;;  %vm2391_vm11 = vcmp.gt.f32.partialorder %v2375_v42, 0.0  ;;  %v3861_v23 = vpop.f32.mrf.mxu0 }
 0x226   :  { %v3829_v29 = vpop.f32.mrf.mxu1  ;;  %v2424_v51 = vsel %vm2388_vm10, %v2372_v45, %v2408_v28  ;;  %v2411_v22 = vmul.f32 %v4908_v37, %v2375_v42  ;;  %v1680_v25 = vadd.f32 %v4856_v60, %v4901_v0 }
 0x227   :  { %v2377_v36 = vadd.f32 %v4890_v3, %v2357_v26  ;;  %v2356_v39 = vadd.f32 %v4880_v48, %v2129_v32  ;;  %v2132_v47 = vadd.f32 %v3829_v29, %v1905_v56  ;;  %3870 = vmatprep.mubr.msk.f32.mxu1 %vm296_vm1, %v2424_v51  ;;  %vm2390_vm12 = vcmp.gt.f32.partialorder %v2374_v27, 0.0  ;;  %v2331_v16 = vpop.f32.mrf.mxu0 }
 0x228   :  { %3871 = vmatmul.mubr.msk.f32.gmra.mxu1 %vm296_vm1, %v2425_v53  ;;  %v2084_v2 = vpop.f32.mrf.mxu1  ;;  %v2410_v44 = vmul.f32 %v4908_v37, %v2374_v27  ;;  %v2427_v21 = vsel %vm2391_vm11, %v2375_v42, %v2411_v22  ;;  %v1908_v1 = vadd.f32 %v5143_v50, %v1680_v25 }
 0x229   :  { %v2376_v4 = vadd.f32 %v4890_v3, %v2356_v39  ;;  %v2359_v48 = vadd.f32 %v4893_v58, %v2132_v47  ;;  %v2131_v33 = vadd.f32 %v2084_v2, %v1904_v43  ;;  %vm2393_vm13 = vcmp.gt.f32.partialorder %v2377_v36, 0.0  ;;  %v3864_v46 = vpop.f32.mrf.mxu0 }
 0x22a   :  { %v3832_v62 = vpop.f32.mrf.mxu1  ;;  %v2426_v12 = vsel %vm2390_vm12, %v2374_v27, %v2410_v44  ;;  %v2413_v60 = vmul.f32 %v4908_v37, %v2377_v36  ;;  %v1683_v58 = vadd.f32 %v4863_v63, %v4914_v38  ;;  %v1910_v43 = vadd.f32 %v5145_v6, %v1682_v59 }
 0x22b   :  { %v2379_v0 = vadd.f32 %v4890_v3, %v2359_v48  ;;  %v2358_v24 = vadd.f32 %v4923_v40, %v2131_v33  ;;  %v2134_v17 = vadd.f32 %v3832_v62, %v1907_v15  ;;  %3873 = vmatprep.mubr.msk.f32.mxu1 %vm296_vm1, %v2426_v12  ;;  %vm2392_vm14 = vcmp.gt.f32.partialorder %v2376_v4, 0.0  ;;  %v2341_v53 = vpop.f32.mrf.mxu0 }
 0x22c   :  { %3874 = vmatmul.mubr.msk.f32.gmra.mxu1 %vm296_vm1, %v2427_v21  ;;  %v2094_v34 = vpop.f32.mrf.mxu1  ;;  %v2412_v20 = vmul.f32 %v4908_v37, %v2376_v4  ;;  %v2429_v63 = vsel %vm2393_vm13, %v2377_v36, %v2413_v60  ;;  %v5009_v60 = vld [vmem:[%s5088_s4 + $0x2] ss:$0 sm:$0xff] }
 0x22d   :  { %v2378_v40 = vadd.f32 %v4890_v3, %v2358_v24  ;;  %v2361_v10 = vadd.f32 %v3858_v7, %v2134_v17  ;;  %v2133_v45 = vadd.f32 %v2094_v34, %v1906_v30  ;;  %vm2395_vm15 = vcmp.gt.f32.partialorder %v2379_v0, 0.0  ;;  %v3895_v62 = vpop.f32.mrf.mxu0 }
 0x22e   :  { %v3835_v54 = vpop.f32.mrf.mxu1  ;;  %v2428_v35 = vsel %vm2392_vm14, %v2376_v4, %v2412_v20  ;;  %v2415_v38 = vmul.f32 %v4908_v37, %v2379_v0  ;;  %v1911_v7 = vadd.f32 %v5144_v19, %v1683_v58 }
 0x22f   :  { %v2381_v56 = vadd.f32 %v4890_v3, %v2361_v10  ;;  %v2360_v41 = vadd.f32 %v2321_v9, %v2133_v45  ;;  %v2136_v42 = vadd.f32 %v3835_v54, %v1909_v55  ;;  %3876 = vmatprep.mubr.msk.f32.mxu1 %vm296_vm1, %v2428_v35  ;;  %vm2394_vm0 = vcmp.gt.f32.partialorder %v2378_v40, 0.0 }
 0x230   :  { %3877 = vmatmul.mubr.msk.f32.gmra.mxu1 %vm296_vm1, %v2429_v63  ;;  %v2104_v49 = vpop.f32.mrf.mxu1  ;;  %v2414_v14 = vmul.f32 %v4908_v37, %v2378_v40  ;;  %v2431_v27 = vsel %vm2395_vm15, %v2379_v0, %v2415_v38 }
 0x231   :  { %v2380_v57 = vadd.f32 %v4890_v3, %v2360_v41  ;;  %v2363_v52 = vadd.f32 %v3861_v23, %v2136_v42  ;;  %v2135_v28 = vadd.f32 %v2104_v49, %v1908_v1  ;;  %vm2397_vm2 = vcmp.gt.f32.partialorder %v2381_v56, 0.0  ;;  %v5030_v42 = vld [vmem:[%s5088_s4 + $0x6] ss:$0 sm:$0xff] }
 0x232   :  { %v3838_v11 = vpop.f32.mrf.mxu1  ;;  %v2430_v5 = vsel %vm2394_vm0, %v2378_v40, %v2414_v14  ;;  %v2417_v26 = vmul.f32 %v4908_v37, %v2381_v56 }
 0x233   :  { %v2383_v32 = vadd.f32 %v4890_v3, %v2363_v52  ;;  %v2362_v9 = vadd.f32 %v2331_v16, %v2135_v28  ;;  %v2138_v29 = vadd.f32 %v3838_v11, %v1911_v7  ;;  %3879 = vmatprep.mubr.msk.f32.mxu1 %vm296_vm1, %v2430_v5  ;;  %vm2396_vm3 = vcmp.gt.f32.partialorder %v2380_v57, 0.0 }
 0x234   :  { %3880 = vmatmul.mubr.msk.f32.gmra.mxu1 %vm296_vm1, %v2431_v27  ;;  %v2114_v51 = vpop.f32.mrf.mxu1  ;;  %v2416_v22 = vmul.f32 %v4908_v37, %v2380_v57  ;;  %v2433_v13 = vsel %vm2397_vm2, %v2381_v56, %v2417_v26 }
 0x235   :  { %v2382_v36 = vadd.f32 %v4890_v3, %v2362_v9  ;;  %v2137_v39 = vadd.f32 %v2114_v51, %v1910_v43  ;;  %v2365_v47 = vadd.f32 %v3864_v46, %v2138_v29  ;;  %v2419_v25 = vmul.f32 %v4908_v37, %v2383_v32 }
 0x236   :  { %v2432_v31 = vsel %vm2396_vm3, %v2380_v57, %v2416_v22  ;;  %vm2399_vm5 = vcmp.gt.f32.partialorder %v2383_v32, 0.0 }
 0x237   :  { %v2385_v2 = vadd.f32 %v4890_v3, %v2365_v47  ;;  %v2364_v61 = vadd.f32 %v2341_v53, %v2137_v39  ;;  %3882 = vmatprep.mubr.msk.f32.mxu1 %vm296_vm1, %v2432_v31  ;;  %vm2398_vm4 = vcmp.gt.f32.partialorder %v2382_v36, 0.0  ;;  %v2418_v15 = vmul.f32 %v4908_v37, %v2382_v36 }
 0x238   :  { %3883 = vmatmul.mubr.msk.f32.gmra.mxu1 %vm296_vm1, %v2433_v13  ;;  %v2435_v8 = vsel %vm2399_vm5, %v2383_v32, %v2419_v25 }
 0x239   :  { %v2384_v44 = vadd.f32 %v4890_v3, %v2364_v61  ;;  %v2434_v4 = vsel %vm2398_vm4, %v2382_v36, %v2418_v15  ;;  %v2421_v48 = vmul.f32 %v4908_v37, %v2385_v2  ;;  %vm2401_vm7 = vcmp.gt.f32.partialorder %v2385_v2, 0.0  ;;  %v2958_v3 = vpop.f32.mrf.mxu0 }
 0x23a   :  { %3885 = vmatprep.mubr.msk.f32.mxu1 %vm296_vm1, %v2434_v4 }
 0x23b   :  { %v2420_v33 = vmul.f32 %v4908_v37, %v2384_v44  ;;  %vm2400_vm6 = vcmp.gt.f32.partialorder %v2384_v44, 0.0  ;;  %v2437_v23 = vsel %vm2401_vm7, %v2385_v2, %v2421_v48  ;;  %v3898_v12 = vpop.f32.mrf.mxu0  ;;  %v5014_v37 = vld [vmem:[%s5088_s4 + $0x5] ss:$0 sm:$0xff]  ;;  %s3948_s4 = smov [#allocation3]  }
 0x23c   :  { %3886 = vmatmul.mubr.msk.f32.gmra.mxu1 %vm296_vm1, %v2435_v8  ;;  %s3178_s8 = sshll.u32 %s3948_s4, 4  ;;  %s3179_s8 = int_to_ptr.vmem [resolvable:$true] %s3178_s8 }
 0x23d   :  { %v2436_v30 = vsel %vm2400_vm6, %v2384_v44, %v2420_v33  ;;  %v2968_v21 = vpop.f32.mrf.mxu0  ;;  %s3923_s9 = scalar_lea.vmem %s3179_s8, 256  ;;  %p3928_p1 = scmp.lt.s32.totalorder %s3179_s8, %s3179_s8 }
 0x23e   :  { %3888 = vmatprep.mubr.msk.f32.mxu1 %vm296_vm1, %v2436_v30  ;;  %p3924_p0 = scmp.ne.s32.totalorder %s3179_s8, %s3923_s9  ;;  %p3929_p2 = scmp.lt.s32.totalorder %s3923_s9, %s3923_s9 }
 0x23f   :  { %v3901_v17 = vpop.f32.mrf.mxu0 }
 0x240   :  { %3889 = vmatmul.mubr.msk.f32.gmra.mxu1 %vm296_vm1, %v2437_v23  ;;  %p3930_p3 = por %p3929_p2, %p3928_p1 }
 0x241   :  { %v2978_v50 = vpop.f32.mrf.mxu0 }
 0x242   :  { %p3931_p4 = pnand %p3930_p3, %p3924_p0 }
 0x243   :  { %v5023_v38 = vpop.f32.mrf.mxu0 }
 0x245   :  { %v5036_v11 = vpop.f32.mrf.mxu0 }
 0x247   :  { %v3907_v22 = vpop.f32.mrf.mxu0 }
 0x249   :  { %v2998_v33 = vpop.f32.mrf.mxu0 }
 0x2e3   :  { %v3869_v0 = vpop.f32.mrf.mxu1 }
 0x2e4   :  { %v2563_v24 = vadd.f32 %v3869_v0, %v5009_v60 }
 0x2e5   :  { %v2557_v58 = vpop.f32.mrf.mxu1 }
 0x2e6   :  { %vm2637_vm1 = vcmp.gt.f32.partialorder %v2563_v24, 0.0  ;;  %v2657_v34 = vmul.f32 %v5014_v37, %v2563_v24  ;;  %v2558_v18 = vadd.f32 %v5009_v60, %v2557_v58 }
 0x2e8   :  { %vm2636_vm8 = vcmp.gt.f32.partialorder %v2558_v18, 0.0  ;;  %v2656_v55 = vmul.f32 %v5014_v37, %v2558_v18  ;;  %v3872_v20 = vpop.f32.mrf.mxu1  ;;  %v2673_v1 = vsel %vm2637_vm1, %v2563_v24, %v2657_v34 }
 0x2e9   :  { %v2573_v59 = vadd.f32 %v3872_v20, %v5009_v60  ;;  %v3038_v35 = vadd.f32 %v3895_v62, %v2673_v1 }
 0x2ea   :  { %v2672_v40 = vsel %vm2636_vm8, %v2558_v18, %v2656_v55  ;;  %v2567_v10 = vpop.f32.mrf.mxu1 }
 0x2eb   :  { %v2659_v45 = vmul.f32 %v5014_v37, %v2573_v59  ;;  %v2568_v16 = vadd.f32 %v5009_v60, %v2567_v10  ;;  %v3037_v54 = vadd.f32 %v2958_v3, %v2672_v40  ;;  %vm2639_vm9 = vcmp.gt.f32.partialorder %v2573_v59, 0.0 }
 0x2ec   :  { %v3875_v63 = vpop.f32.mrf.mxu1  ;;  %v3074_v43 = vmul.f32 %v5030_v42, %v3038_v35  ;;  %vm3054_vm13 = vcmp.gt.f32.partialorder %v3038_v35, 0.0 }
 0x2ed   :  { %vm2638_vm10 = vcmp.gt.f32.partialorder %v2568_v16, 0.0  ;;  %v2658_v56 = vmul.f32 %v5014_v37, %v2568_v16  ;;  %v2583_v41 = vadd.f32 %v3875_v63, %v5009_v60  ;;  %vm3053_vm11 = vcmp.gt.f32.partialorder %v3037_v54, 0.0 }
 0x2ee   :  { %v2577_v49 = vpop.f32.mrf.mxu1  ;;  %v3073_v19 = vmul.f32 %v5030_v42, %v3037_v54  ;;  %v2675_v7 = vsel %vm2639_vm9, %v2573_v59, %v2659_v45  ;;  %v3090_v51 = vsel %vm3054_vm13, %v3038_v35, %v3074_v43 }
 0x2ef   :  { %v2674_v14 = vsel %vm2638_vm10, %v2568_v16, %v2658_v56  ;;  %v2578_v46 = vadd.f32 %v5009_v60, %v2577_v49  ;;  %v2661_v52 = vmul.f32 %v5014_v37, %v2583_v41  ;;  %vm2641_vm12 = vcmp.gt.f32.partialorder %v2583_v41, 0.0 }
 0x2f0   :  { %v3039_v57 = vadd.f32 %v2968_v21, %v2674_v14  ;;  %v3878_v28 = vpop.f32.mrf.mxu1  ;;  %v3089_v6 = vsel %vm3053_vm11, %v3037_v54, %v3073_v19  ;;  %v3040_v27 = vadd.f32 %v3898_v12, %v2675_v7  ;;  %v3910_v12 = vpop.f32.mrf.mxu0 }
 0x2f1   :  { %v2660_v5 = vmul.f32 %v5014_v37, %v2578_v46  ;;  %3105 = vxpose.xlu0.b32.start [1/8] (short) (narrow) %v3089_v6, 8  ;;  %vm2640_vm14 = vcmp.gt.f32.partialorder %v2578_v46, 0.0  ;;  %v2677_v32 = vsel %vm2641_vm12, %v2583_v41, %v2661_v52  ;;  %v2593_v47 = vadd.f32 %v3878_v28, %v5009_v60 }
 0x2f2   :  { %v2587_v26 = vpop.f32.mrf.mxu1  ;;  %v3075_v53 = vmul.f32 %v5030_v42, %v3039_v57  ;;  %vm3055_vm15 = vcmp.gt.f32.partialorder %v3039_v57, 0.0  ;;  %vm3056_vm0 = vcmp.gt.f32.partialorder %v3040_v27, 0.0  ;;  %v3076_v13 = vmul.f32 %v5030_v42, %v3040_v27  ;;  %v3008_v10 = vpop.f32.mrf.mxu0 }
 0x2f3   :  { %v2588_v9 = vadd.f32 %v5009_v60, %v2587_v26  ;;  %v2676_v36 = vsel %vm2640_vm14, %v2578_v46, %v2660_v5  ;;  %v3042_v25 = vadd.f32 %v3901_v17, %v2677_v32  ;;  %vm2643_vm5 = vcmp.gt.f32.partialorder %v2593_v47, 0.0 }
 0x2f4   :  { %v3881_v29 = vpop.f32.mrf.mxu1  ;;  %v3041_v15 = vadd.f32 %v2978_v50, %v2676_v36  ;;  %v3091_v48 = vsel %vm3055_vm15, %v3039_v57, %v3075_v53  ;;  %v3092_v3 = vsel %vm3056_vm0, %v3040_v27, %v3076_v13  ;;  %v2663_v21 = vmul.f32 %v5014_v37, %v2593_v47  ;;  %v3913_v52 = vpop.f32.mrf.mxu0 }
 0x2f5   :  { %v2603_v39 = vadd.f32 %v3881_v29, %v5009_v60  ;;  %3106 = vxpose.xlu0.b32.cont [2/8] (short) (narrow) %v3090_v51, 8  ;;  %vm2642_vm3 = vcmp.gt.f32.partialorder %v2588_v9, 0.0  ;;  %v2662_v44 = vmul.f32 %v5014_v37, %v2588_v9  ;;  %vm3058_vm6 = vcmp.gt.f32.partialorder %v3042_v25, 0.0 }
 0x2f6   :  { %v2597_v31 = vpop.f32.mrf.mxu1  ;;  %v3077_v55 = vmul.f32 %v5030_v42, %v3041_v15  ;;  %vm3057_vm1 = vcmp.gt.f32.partialorder %v3041_v15, 0.0  ;;  %v3078_v40 = vmul.f32 %v5030_v42, %v3042_v25  ;;  %v2679_v45 = vsel %vm2643_vm5, %v2593_v47, %v2663_v21  ;;  %v3018_v29 = vpop.f32.mrf.mxu0 }
 0x2f7   :  { %vm2645_vm2 = vcmp.gt.f32.partialorder %v2603_v39, 0.0  ;;  %v2665_v2 = vmul.f32 %v5014_v37, %v2603_v39  ;;  %v2598_v61 = vadd.f32 %v5009_v60, %v2597_v31  ;;  %v2678_v17 = vsel %vm2642_vm3, %v2588_v9, %v2662_v44 }
 0x2f8   :  { %v3884_v4 = vpop.f32.mrf.mxu1  ;;  %v3043_v16 = vadd.f32 %v5036_v11, %v2678_v17  ;;  %v3093_v49 = vsel %vm3057_vm1, %v3041_v15, %v3077_v55  ;;  %v3044_v28 = vadd.f32 %v5023_v38, %v2679_v45  ;;  %v3094_v6 = vsel %vm3058_vm6, %v3042_v25, %v3078_v40  ;;  %v3916_v13 = vpop.f32.mrf.mxu0 }
 0x2f9   :  { %v2681_v8 = vsel %vm2645_vm2, %v2603_v39, %v2665_v2  ;;  %vm2644_vm4 = vcmp.gt.f32.partialorder %v2598_v61, 0.0  ;;  %v2664_v30 = vmul.f32 %v5014_v37, %v2598_v61  ;;  %v2613_v23 = vadd.f32 %v3884_v4, %v5009_v60  ;;  %3107 = vxpose.xlu0.b32.cont [3/8] (short) (narrow) %v3091_v48, 8 }
 0x2fa   :  { %v2607_v62 = vpop.f32.mrf.mxu1  ;;  %v3046_v58 = vadd.f32 %v3907_v22, %v2681_v8  ;;  %vm3059_vm12 = vcmp.gt.f32.partialorder %v3043_v16, 0.0  ;;  %v3079_v27 = vmul.f32 %v5030_v42, %v3043_v16  ;;  %vm3060_vm15 = vcmp.gt.f32.partialorder %v3044_v28, 0.0 }
 0x2fb   :  { %v2680_v0 = vsel %vm2644_vm4, %v2598_v61, %v2664_v30  ;;  %v2608_v24 = vadd.f32 %v5009_v60, %v2607_v62  ;;  %v2667_v20 = vmul.f32 %v5014_v37, %v2613_v23  ;;  %vm2647_vm8 = vcmp.gt.f32.partialorder %v2613_v23, 0.0 }
 0x2fc   :  { %v3887_v34 = vpop.f32.mrf.mxu1  ;;  %v3045_v18 = vadd.f32 %v2998_v33, %v2680_v0  ;;  %v3082_v19 = vmul.f32 %v5030_v42, %v3046_v58  ;;  %vm3062_vm10 = vcmp.gt.f32.partialorder %v3046_v58, 0.0  ;;  %v3080_v38 = vmul.f32 %v5030_v42, %v3044_v28 }
 0x2fd   :  { %vm2646_vm7 = vcmp.gt.f32.partialorder %v2608_v24, 0.0  ;;  %v2666_v50 = vmul.f32 %v5014_v37, %v2608_v24  ;;  %3108 = vxpose.xlu0.b32.cont [4/8] (short) (narrow) %v3092_v3, 8  ;;  %v2683_v7 = vsel %vm2647_vm8, %v2613_v23, %v2667_v20  ;;  %v2623_v14 = vadd.f32 %v3887_v34, %v5009_v60 }
 0x2fe   :  { %v2617_v1 = vpop.f32.mrf.mxu1  ;;  %vm3061_vm9 = vcmp.gt.f32.partialorder %v3045_v18, 0.0  ;;  %v3081_v59 = vmul.f32 %v5030_v42, %v3045_v18  ;;  %v3048_v43 = vadd.f32 %v3910_v12, %v2683_v7  ;;  %v3098_v11 = vsel %vm3062_vm10, %v3046_v58, %v3082_v19 }
 0x2ff   :  { %v2682_v54 = vsel %vm2646_vm7, %v2608_v24, %v2666_v50  ;;  %v2618_v35 = vadd.f32 %v5009_v60, %v2617_v1  ;;  %v2669_v26 = vmul.f32 %v5014_v37, %v2623_v14  ;;  %vm2649_vm14 = vcmp.gt.f32.partialorder %v2623_v14, 0.0 }
 0x300   :  { %v3047_v63 = vadd.f32 %v3008_v10, %v2682_v54  ;;  %v3890_v56 = vpop.f32.mrf.mxu1  ;;  %v3097_v41 = vsel %vm3061_vm9, %v3045_v18, %v3081_v59  ;;  %v3095_v22 = vsel %vm3059_vm12, %v3043_v16, %v3079_v27  ;;  %v3084_v36 = vmul.f32 %v5030_v42, %v3048_v43 }
 0x301   :  { %v2668_v46 = vmul.f32 %v5014_v37, %v2618_v35  ;;  %3139 = vxpose.xlu1.b32.start [1/8] (short) (narrow) %v3097_v41, 8  ;;  %3109 = vxpose.xlu0.b32.cont [5/8] (short) (narrow) %v3093_v49, 8  ;;  %vm2648_vm11 = vcmp.gt.f32.partialorder %v2618_v35, 0.0  ;;  %v2685_v39 = vsel %vm2649_vm14, %v2623_v14, %v2669_v26  ;;  %v2633_v47 = vadd.f32 %v3890_v56, %v5009_v60 }
 0x302   :  { %v2627_v57 = vpop.f32.mrf.mxu1  ;;  %v3083_v5 = vmul.f32 %v5030_v42, %v3047_v63  ;;  %vm3063_vm13 = vcmp.gt.f32.partialorder %v3047_v63, 0.0  ;;  %vm3064_vm0 = vcmp.gt.f32.partialorder %v3048_v43, 0.0  ;;  %v3050_v25 = vadd.f32 %v3913_v52, %v2685_v39 }
 0x303   :  { %v2684_v32 = vsel %vm2648_vm11, %v2618_v35, %v2668_v46  ;;  %v2628_v9 = vadd.f32 %v5009_v60, %v2627_v57  ;;  %v3100_v2 = vsel %vm3064_vm0, %v3048_v43, %v3084_v36  ;;  %v3096_v61 = vsel %vm3060_vm15, %v3044_v28, %v3080_v38  ;;  %v3028_v60 = vpop.f32.mrf.mxu0 }
 0x304   :  { %v3049_v51 = vadd.f32 %v3018_v29, %v2684_v32  ;;  %v3099_v53 = vsel %vm3063_vm13, %v3047_v63, %v3083_v5  ;;  %v2671_v44 = vmul.f32 %v5014_v37, %v2633_v47  ;;  %vm2651_vm4 = vcmp.gt.f32.partialorder %v2633_v47, 0.0 }
 0x305   :  { %3140 = vxpose.xlu1.b32.cont [2/8] (short) (narrow) %v3098_v11, 8  ;;  %3110 = vxpose.xlu0.b32.cont [6/8] (short) (narrow) %v3094_v6, 8  ;;  %v2670_v31 = vmul.f32 %v5014_v37, %v2628_v9  ;;  %vm2650_vm2 = vcmp.gt.f32.partialorder %v2628_v9, 0.0  ;;  %v3086_v8 = vmul.f32 %v5030_v42, %v3050_v25  ;;  %vm3066_vm5 = vcmp.gt.f32.partialorder %v3050_v25, 0.0 }
 0x306   :  { %v3085_v15 = vmul.f32 %v5030_v42, %v3049_v51  ;;  %vm3065_vm3 = vcmp.gt.f32.partialorder %v3049_v51, 0.0  ;;  %v2687_v30 = vsel %vm2651_vm4, %v2633_v47, %v2671_v44  ;;  %vm3137_vm1 = vcmask 523264  }
 0x307   :  { %v2686_v4 = vsel %vm2650_vm2, %v2628_v9, %v2670_v31  ;;  %v3052_v23 = vadd.f32 %v3916_v13, %v2687_v30  ;;  %v3102_v62 = vsel %vm3066_vm5, %v3050_v25, %v3086_v8 }
 0x308   :  { %v3051_v48 = vadd.f32 %v3028_v60, %v2686_v4  ;;  %v3101_v33 = vsel %vm3065_vm3, %v3049_v51, %v3085_v15 }
 0x309   :  { %3141 = vxpose.xlu1.b32.cont [3/8] (short) (narrow) %v3099_v53, 8  ;;  %3111 = vxpose.xlu0.b32.cont [7/8] (short) (narrow) %v3095_v22, 8  ;;  %v3088_v12 = vmul.f32 %v5030_v42, %v3052_v23  ;;  %vm3068_vm7 = vcmp.gt.f32.partialorder %v3052_v23, 0.0 }
 0x30a   :  { %v3087_v3 = vmul.f32 %v5030_v42, %v3051_v48  ;;  %vm3067_vm6 = vcmp.gt.f32.partialorder %v3051_v48, 0.0 }
 0x30b   :  { %v3104_v21 = vsel %vm3068_vm7, %v3052_v23, %v3088_v12 }
 0x30c   :  { %v3103_v37 = vsel %vm3067_vm6, %v3051_v48, %v3087_v3 }
 0x30d   :  { %3142 = vxpose.xlu1.b32.cont [4/8] (short) (narrow) %v3100_v2, 8  ;;  %3112 = vxpose.xlu0.b32.end [8/8] (short) (narrow) %v3096_v61, 8 }
 0x311   :  { %3143 = vxpose.xlu1.b32.cont [5/8] (short) (narrow) %v3101_v33, 8 }
 0x315   :  { %3144 = vxpose.xlu1.b32.cont [6/8] (short) (narrow) %v3102_v62, 8 }
 0x319   :  { %3145 = vxpose.xlu1.b32.cont [7/8] (short) (narrow) %v3103_v37, 8 }
 0x31d   :  { %3146 = vxpose.xlu1.b32.end [8/8] (short) (narrow) %v3104_v21, 8 }
 0x36d   :  { %v3121_v0 = vpop.trf.xlu0 }
 0x36e   :  { %3138 = vst.msk [vmem:[#allocation3] sm:$0xff] %vm3137_vm1, %v3121_v0 }
 0x37d   :  { %v3155_v24 = vpop.trf.xlu1 }
 0x37e   :  { %3172 = vst.msk [vmem:[#allocation3 + $0x8] sm:$0xff] %vm3137_vm1, %v3155_v24 }
 0x37f   :  { %3934 = shalt.err (!%p3931_p4)
}
 0x380   :  { %s3949_s10 = smov 128   ;;  %s3950_s11 = smov 8  }
 0x381   :  { %3184 = dma.vmem_to_hbm [thread:$0]  %s3179_s8, 256, %s5089_s5, [#allocation4], %s3949_s10, %s3949_s10, %s3950_s11  }
 0x382   :  { %3943 = dma.done.wait [#allocation4], 256  }
 0x383   :  { %3944 = vsyncadd [#allocation4], 4294967040 }
 0x384   :  { %3188 = vsyncpa [#allocation4], 1 }

</bundles_post_ra>
